<compile_context>
chip_gen: v5e
topology: v5e:2x2
jax: 0.10.0
libtpu: 0.0.40
codegen_flags: <defaults>
</compile_context>

<pallas_src>
import jax
import jax.numpy as jnp
from jax import lax
from jax.experimental import pallas as pl
from jax.experimental.pallas import tpu as pltpu

FILTER_SIZES = (3, 3)     # args.filter_size = "3-3"
FILTER_NUMS = (16, 32)    # args.filter_num  = "16-32"
POOL_SIZE = 2             # args.pool_size
FC_SIZE = 16              # args.fc_size
OUTPUT_DIM = 4            # output_dim
WORDVEC_LEN = 8           # wordvec_len
OUT_PAD = 128             # lane-dense width of the kernel output (sliced in wrapper)
B_BLK = 16                # batch tile: B_BLK * Lout1 = 256 matmul rows (fills 2x256 MXU)


def _dims(L):
    """Static per-layer geometry derived from the input length L (with sanity asserts)."""
    K1, K2 = FILTER_SIZES
    # TODO(synk): args.pool_size == 0 ("no pooling") config path is not implemented.
    assert POOL_SIZE >= 1, "pool_size == 0 path not implemented"
    pad1 = K1 // 2
    Lout1 = L + 2 * pad1 - K1 + 1
    assert Lout1 == L, "shift-and-mask conv1 assumes odd kernel (same-length output)"
    assert Lout1 % POOL_SIZE == 0, "flattened strided pooling needs Lout1 % pool == 0"
    Lp1 = Lout1 // POOL_SIZE                   # after maxpool1 (floor)
    Lout2 = Lp1 - K2 + 1                       # conv2 output length (no padding)
    n_cov = (Lout2 // POOL_SIZE) * POOL_SIZE   # rows covered by maxpool2 (floor)
    assert n_cov >= 1, "sequence too short: conv2 output shorter than pool window"
    return pad1, Lout1, Lp1, Lout2, n_cov


def _shift_rows(y, s):
    """out[i] = y[i + s] along the row (sublane) axis, zero-filled outside [0, R)."""
    if s == 0:
        return y
    R, C = y.shape
    z = jnp.zeros((abs(s), C), y.dtype)
    if s > 0:
        return jnp.concatenate([y[s:, :], z], axis=0)
    return jnp.concatenate([z, y[:R + s, :]], axis=0)


# ------------------------------ fused Pallas kernel ------------------------------

def convnet_fused_kernel(x_ref, w1_ref, b1_ref, w2_ref, b2_ref,
                         wf1_ref, bf1_ref, wf2_ref, bf2_ref,
                         o_ref, h1_s):
    """One batch tile of the full ConvNet forward, entirely VMEM/vreg-resident.

    x_ref:   (Bb, L, Cin)           w1_ref: (K1, Cin, C1)   b1_ref: (1, C1)
    w2_ref:  (K2, C1, C2)           b2_ref: (1, C2)
    wf1_ref: (C2, FC)  bf1_ref: (1, FC)
    wf2_ref: (FC, OUT_PAD) lane-padded   bf2_ref: (1, OUT_PAD) lane-padded
    o_ref:   (Bb, OUT_PAD)  (first OUTPUT_DIM lanes are the real logits)
    h1_s:    (Bb*L, C1) VMEM scratch for the conv1 activation (strided pool source)
    """
    Bb, L, Cin = x_ref.shape
    K1, K2 = FILTER_SIZES
    C1, C2 = FILTER_NUMS
    pad1, Lout1, Lp1, Lout2, n_cov = _dims(L)

    # ---- conv1 ("same" padding) as K1 tap-accumulated full-row MXU matmuls ----
    # h1[b, t] = sum_k x[b, t + k - pad1] @ w1[k]; out-of-range taps contribute 0.
    # Matmul is row-wise, so compute y_k = X @ w1[k] on ALL rows, then align with a
    # static sublane shift and mask the edge rows (the mask also kills cross-batch
    # leakage introduced by shifting the batch-flattened layout).
    x2d = x_ref[...].reshape(Bb * L, Cin)                        # batch folded into rows
    t1 = lax.broadcasted_iota(jnp.int32, (Bb * L, C1), 0) % L    # time index per row
    acc1 = jnp.zeros((Bb * L, C1), jnp.float32)
    for k in range(K1):
        s = k - pad1
        yk = jnp.dot(x2d, w1_ref[k], preferred_element_type=jnp.float32)
        yk = _shift_rows(yk, s)
        if s != 0:
            yk = jnp.where((t1 + s >= 0) & (t1 + s < L), yk, 0.0)
        acc1 = acc1 + yk
    h1_s[...] = acc1 + b1_ref[...]                               # (Bb*Lout1, C1)

    # ---- maxpool1 + ReLU: one whole-block sublane-strided read per pool phase ----
    pooled = h1_s[pl.ds(0, Bb * Lp1, stride=POOL_SIZE), :]
    for p in range(1, POOL_SIZE):
        pooled = jnp.maximum(pooled, h1_s[pl.ds(p, Bb * Lp1, stride=POOL_SIZE), :])
    pooled = jnp.maximum(pooled, 0.0)                            # (Bb*Lp1, C1); row b*Lp1+t
    # TODO(synk): Dropout(cnndrop_out) is eval-mode identity (no train-time RNG mask).

    # ---- conv2 (valid) as K2 tap-accumulated full-row MXU matmuls ----
    acc2 = jnp.zeros((Bb * Lp1, C2), jnp.float32)
    for k in range(K2):
        yk = jnp.dot(pooled, w2_ref[k], preferred_element_type=jnp.float32)
        acc2 = acc2 + _shift_rows(yk, k)                         # out row t needs row t+k
    h2 = acc2 + b2_ref[...]                                      # rows t >= Lout2 invalid

    # ---- maxpool2 + ReLU + global max over time == ReLU(row max over covered rows) ----
    feats = [jnp.max(h2[b * Lp1:b * Lp1 + n_cov, :], axis=0, keepdims=True)
             for b in range(Bb)]                                 # Bb is small & static
    feat = jnp.maximum(jnp.concatenate(feats, axis=0), 0.0)      # (Bb, C2)

    # ---- FC head: batched matmuls; lane-padded FC2 -> dense 128-lane output store ----
    z = jnp.maximum(jnp.dot(feat, wf1_ref[...], preferred_element_type=jnp.float32)
                    + bf1_ref[...], 0.0)
    o_ref[...] = (jnp.dot(z, wf2_ref[...], preferred_element_type=jnp.float32)
                  + bf2_ref[...])


# --------------------------------- wrappers ---------------------------------

def convnet_forward(x, prep, *, block_b=B_BLK):
    """x: (B, L, wordvec_len) float32 — same tensor the torch module receives."""
    B, L, Cin = x.shape
    K1, K2 = FILTER_SIZES
    C1, C2 = FILTER_NUMS
    _dims(L)  # validate static geometry

    Bb = min(block_b, B)
    n_blocks = pl.cdiv(B, Bb)
    Bpad = n_blocks * Bb
    if Bpad != B:
        x = jnp.pad(x, ((0, Bpad - B), (0, 0), (0, 0)))          # pad rows are sliced off

    flops_per_sample = 2 * (L * K1 * Cin * C1 + (L // POOL_SIZE) * K2 * C1 * C2
                            + C2 * FC_SIZE + FC_SIZE * OUT_PAD)
    bytes_accessed = 4 * (x.size + sum(int(v.size) for v in prep.values())
                          + Bpad * OUT_PAD)
    cost = pl.CostEstimate(flops=int(Bpad * flops_per_sample), transcendentals=0,
                           bytes_accessed=int(bytes_accessed))

    def const(nd):                      # weights/biases: same block every grid step
        return lambda i: (0,) * nd

    out_padded = pl.pallas_call(
        convnet_fused_kernel,
        out_shape=jax.ShapeDtypeStruct((Bpad, OUT_PAD), jnp.float32),
        grid=(n_blocks,),
        in_specs=[
            pl.BlockSpec((Bb, L, Cin), lambda i: (i, 0, 0)),     # batch-tiled input
            pl.BlockSpec((K1, Cin, C1), const(3)),
            pl.BlockSpec((1, C1), const(2)),
            pl.BlockSpec((K2, C1, C2), const(3)),
            pl.BlockSpec((1, C2), const(2)),
            pl.BlockSpec((C2, FC_SIZE), const(2)),
            pl.BlockSpec((1, FC_SIZE), const(2)),
            pl.BlockSpec((FC_SIZE, OUT_PAD), const(2)),
            pl.BlockSpec((1, OUT_PAD), const(2)),
        ],
        out_specs=pl.BlockSpec((Bb, OUT_PAD), lambda i: (i, 0)),
        scratch_shapes=[pltpu.VMEM((Bb * L, C1), jnp.float32)],  # conv1 activation
        compiler_params=pltpu.CompilerParams(
            dimension_semantics=("parallel",),                   # shard batch across TCs (v7x)
            vmem_limit_bytes=32 * 1024 * 1024),
        cost_estimate=cost,
    )(x, prep["w1"], prep["b1"], prep["w2"], prep["b2"],
      prep["wf1"], prep["bf1"], prep["wf2"], prep["bf2"])
    # Consumers that can take the lane-padded (B, 128) slab should use out_padded directly;
    # the slice here just restores the exact torch output shape.
    return out_padded[:B, :OUTPUT_DIM]


def init_params(key):
    """Deterministic parameters with torch Conv1d/Linear shapes and init scale."""
    params = {}
    cin = WORDVEC_LEN
    keys = jax.random.split(key, 2 * len(FILTER_SIZES) + 4)
    i = 0
    for li, (k, cout) in enumerate(zip(FILTER_SIZES, FILTER_NUMS)):
        bound = 1.0 / float(cin * k) ** 0.5
        params[f"conv{li+1}_w"] = jax.random.uniform(
            keys[i], (cout, cin, k), jnp.float32, -bound, bound); i += 1
        params[f"conv{li+1}_b"] = jax.random.uniform(
            keys[i], (cout,), jnp.float32, -bound, bound); i += 1
        cin = cout
    b1 = 1.0 / float(FILTER_NUMS[-1]) ** 0.5
    params["fc1_w"] = jax.random.uniform(keys[i], (FC_SIZE, FILTER_NUMS[-1]),
                                         jnp.float32, -b1, b1); i += 1
    params["fc1_b"] = jax.random.uniform(keys[i], (FC_SIZE,), jnp.float32, -b1, b1); i += 1
    b2 = 1.0 / float(FC_SIZE) ** 0.5
    params["fc2_w"] = jax.random.uniform(keys[i], (OUTPUT_DIM, FC_SIZE),
                                         jnp.float32, -b2, b2); i += 1
    params["fc2_b"] = jax.random.uniform(keys[i], (OUTPUT_DIM,), jnp.float32, -b2, b2)
    return params


def prepare_params(params):
    """One-time re-layout (hoisted out of the forward):
       conv (Cout,Cin,K) -> tap form (K,Cin,Cout); Linear (out,in) -> (in,out);
       biases -> (1,C); FC2 lane-padded to OUT_PAD for a dense output store."""
    prep = {}
    cin = WORDVEC_LEN
    for li, (k, cout) in enumerate(zip(FILTER_SIZES, FILTER_NUMS)):
        w = params[f"conv{li+1}_w"]                               # (Cout, Cin, K)
        prep[f"w{li+1}"] = jnp.transpose(w, (2, 1, 0))            # (K, Cin, Cout)
        prep[f"b{li+1}"] = params[f"conv{li+1}_b"].reshape(1, cout)
        cin = cout
    prep["wf1"] = jnp.transpose(params["fc1_w"])                  # (C2, FC)
    prep["bf1"] = params["fc1_b"].reshape(1, FC_SIZE)
    wf2 = jnp.transpose(params["fc2_w"])                          # (FC, OUT)
    prep["wf2"] = jnp.pad(wf2, ((0, 0), (0, OUT_PAD - OUTPUT_DIM)))
    prep["bf2"] = jnp.pad(params["fc2_b"], (0, OUT_PAD - OUTPUT_DIM)).reshape(1, OUT_PAD)
    # args.if_bn == 'N' => no BatchNorm1d parameters.
    return prep


# ------------------------- pure-JAX reference (validation) -------------------------

def maxpool1d_ref(x, pool):
    B, L, C = x.shape
    Lp = L // pool
    return jnp.max(x[:, :Lp * pool, :].reshape(B, Lp, pool, C), axis=2)


def convnet_reference(x, params):
    prec = jax.lax.Precision.HIGHEST
    h = x
    for li, (k, _) in enumerate(zip(FILTER_SIZES, FILTER_NUMS)):
        pad = k // 2 if li == 0 else 0
        w = params[f"conv{li+1}_w"]                               # (Cout, Cin, K)
        b = params[f"conv{li+1}_b"]
        hpad = jnp.pad(h, ((0, 0), (pad, pad), (0, 0)))
        Lout = hpad.shape[1] - k + 1
        out = sum(jnp.einsum("blc,oc->blo", hpad[:, j:j + Lout, :], w[:, :, j],
                             precision=prec)
                  for j in range(k))
        h = out + b[None, None, :]
        if POOL_SIZE != 0:
            h = maxpool1d_ref(h, POOL_SIZE)
        h = jnp.maximum(h, 0.0)
    feat = jnp.max(h, axis=1)
    z = jnp.maximum(jnp.dot(feat, params["fc1_w"].T, precision=prec)
                    + params["fc1_b"], 0.0)
    return jnp.dot(z, params["fc2_w"].T, precision=prec) + params["fc2_b"]


if __name__ == "__main__":
    key = jax.random.PRNGKey(0)
    kx, kp = jax.random.split(key)
    B, L = 32, 16                                   # 2 grid steps of B_BLK=16
    x = jax.random.normal(kx, (B, L, WORDVEC_LEN), jnp.float32)
    params = init_params(kp)
    prep = prepare_params(params)                   # one-time weight re-layout (hoisted)

    fwd = jax.jit(lambda xx, pp: convnet_forward(xx, pp, block_b=B_BLK))
    out = jax.block_until_ready(fwd(x, prep))
    ref = jax.block_until_ready(convnet_reference(x, params))
    assert out.shape == (B, OUTPUT_DIM), out.shape
    assert jnp.allclose(out, ref, rtol=1e-3, atol=1e-3), (out, ref)
    print("KERNEL_OK")
</pallas_src>

<mosaic_0001>
module attributes {stable_mosaic.version = 11 : i64} {
  func.func @convnet_fused_kernel(%arg0: i32, %arg1: memref<16x16x8xf32, #tpu.memory_space<vmem>>, %arg2: memref<3x8x16xf32, #tpu.memory_space<vmem>>, %arg3: memref<1x16xf32, #tpu.memory_space<vmem>>, %arg4: memref<3x16x32xf32, #tpu.memory_space<vmem>>, %arg5: memref<1x32xf32, #tpu.memory_space<vmem>>, %arg6: memref<32x16xf32, #tpu.memory_space<vmem>>, %arg7: memref<1x16xf32, #tpu.memory_space<vmem>>, %arg8: memref<16x128xf32, #tpu.memory_space<vmem>>, %arg9: memref<1x128xf32, #tpu.memory_space<vmem>>, %arg10: memref<16x128xf32, #tpu.memory_space<vmem>>, %arg11: memref<256x16xf32, #tpu.memory_space<vmem>>) attributes {dimension_semantics = [#tpu.dimension_semantics<parallel>], iteration_bounds = array<i64: 2>, scalar_prefetch = 0 : i64, scratch_operands = 1 : i64, tpu.core_type = #tpu.core_type<tc>, window_params = [{transform_indices = @transform_0, window_bounds = array<i64: 16, 16, 8>}, {pipeline_mode = #tpu.pipeline_mode<synchronous>, transform_indices = @transform_1, window_bounds = array<i64: 3, 8, 16>}, {pipeline_mode = #tpu.pipeline_mode<synchronous>, transform_indices = @transform_2, window_bounds = array<i64: 1, 16>}, {pipeline_mode = #tpu.pipeline_mode<synchronous>, transform_indices = @transform_3, window_bounds = array<i64: 3, 16, 32>}, {pipeline_mode = #tpu.pipeline_mode<synchronous>, transform_indices = @transform_4, window_bounds = array<i64: 1, 32>}, {pipeline_mode = #tpu.pipeline_mode<synchronous>, transform_indices = @transform_5, window_bounds = array<i64: 32, 16>}, {pipeline_mode = #tpu.pipeline_mode<synchronous>, transform_indices = @transform_6, window_bounds = array<i64: 1, 16>}, {pipeline_mode = #tpu.pipeline_mode<synchronous>, transform_indices = @transform_7, window_bounds = array<i64: 16, 128>}, {pipeline_mode = #tpu.pipeline_mode<synchronous>, transform_indices = @transform_8, window_bounds = array<i64: 1, 128>}, {transform_indices = @transform_9, window_bounds = array<i64: 16, 128>}]} {
    %c0 = arith.constant 0 : index
    %c0_0 = arith.constant 0 : index
    %c0_1 = arith.constant 0 : index
    %0 = vector.load %arg1[%c0, %c0_0, %c0_1] : memref<16x16x8xf32, #tpu.memory_space<vmem>>, vector<16x16x8xf32>
    %1 = vector.shape_cast %0 : vector<16x16x8xf32> to vector<256x8xf32>
    %2 = tpu.iota {dimensions = array<i32: 0>} : vector<256x16xi32>
    %c16_i32 = arith.constant 16 : i32
    %c0_i32 = arith.constant 0 : i32
    %3 = arith.cmpi eq, %c16_i32, %c0_i32 : i32
    %c1_i32 = arith.constant 1 : i32
    %4 = arith.select %3, %c1_i32, %c16_i32 : i32
    %5 = vector.broadcast %4 : i32 to vector<256x16xi32>
    %6 = arith.remsi %2, %5 : vector<256x16xi32>
    %c0_i32_2 = arith.constant 0 : i32
    %7 = vector.broadcast %c0_i32_2 : i32 to vector<256x16xi32>
    %8 = arith.cmpi ne, %6, %7 : vector<256x16xi32>
    %c0_i32_3 = arith.constant 0 : i32
    %9 = vector.broadcast %c0_i32_3 : i32 to vector<256x16xi32>
    %10 = arith.cmpi slt, %6, %9 : vector<256x16xi32>
    %c0_i32_4 = arith.constant 0 : i32
    %11 = arith.cmpi slt, %4, %c0_i32_4 : i32
    %12 = vector.broadcast %11 : i1 to vector<256x16xi1>
    %13 = vector.broadcast %12 : vector<256x16xi1> to vector<256x16xi1>
    %14 = arith.xori %10, %13 : vector<256x16xi1>
    %15 = arith.andi %14, %8 : vector<256x16xi1>
    %16 = vector.broadcast %4 : i32 to vector<256x16xi32>
    %17 = arith.addi %6, %16 : vector<256x16xi32>
    %18 = arith.select %15, %17, %6 : vector<256x16xi1>, vector<256x16xi32>
    %cst = arith.constant 0.000000e+00 : f32
    %19 = vector.broadcast %cst : f32 to vector<256x16xf32>
    %c0_5 = arith.constant 0 : index
    %c0_6 = arith.constant 0 : index
    %c0_7 = arith.constant 0 : index
    %20 = vector.load %arg2[%c0_5, %c0_6, %c0_7] : memref<3x8x16xf32, #tpu.memory_space<vmem>>, vector<1x8x16xf32>
    %21 = vector.shape_cast %20 : vector<1x8x16xf32> to vector<8x16xf32>
    %cst_8 = arith.constant dense<0.000000e+00> : vector<256x16xf32>
    %22 = tpu.matmul %1, %21, %cst_8 {dimension_numbers = #tpu.dot_dimension_numbers<[1], [0], [0], [1], [0, 0, 1, 1], [], []>} : vector<256x8xf32>, vector<8x16xf32>, vector<256x16xf32> -> vector<256x16xf32>
    %cst_9 = arith.constant 0.000000e+00 : f32
    %23 = vector.broadcast %cst_9 : f32 to vector<1x16xf32>
    %24 = vector.extract_strided_slice %22 {offsets = [0, 0], sizes = [255, 16], strides = [1, 1]} : vector<256x16xf32> to vector<255x16xf32>
    %25 = tpu.concatenate %23, %24 in 0 : vector<1x16xf32>, vector<255x16xf32> -> vector<256x16xf32>
    %c-1_i32 = arith.constant -1 : i32
    %26 = vector.broadcast %c-1_i32 : i32 to vector<256x16xi32>
    %27 = arith.addi %18, %26 : vector<256x16xi32>
    %c0_i32_10 = arith.constant 0 : i32
    %28 = vector.broadcast %c0_i32_10 : i32 to vector<256x16xi32>
    %29 = arith.cmpi sge, %27, %28 : vector<256x16xi32>
    %c-1_i32_11 = arith.constant -1 : i32
    %30 = vector.broadcast %c-1_i32_11 : i32 to vector<256x16xi32>
    %31 = arith.addi %18, %30 : vector<256x16xi32>
    %c16_i32_12 = arith.constant 16 : i32
    %32 = vector.broadcast %c16_i32_12 : i32 to vector<256x16xi32>
    %33 = arith.cmpi slt, %31, %32 : vector<256x16xi32>
    %34 = arith.andi %29, %33 : vector<256x16xi1>
    %cst_13 = arith.constant 0.000000e+00 : f32
    %35 = vector.broadcast %cst_13 : f32 to vector<256x16xf32>
    %36 = arith.select %34, %25, %35 : vector<256x16xi1>, vector<256x16xf32>
    %37 = arith.addf %19, %36 : vector<256x16xf32>
    %c1 = arith.constant 1 : index
    %c0_14 = arith.constant 0 : index
    %c0_15 = arith.constant 0 : index
    %38 = vector.load %arg2[%c1, %c0_14, %c0_15] : memref<3x8x16xf32, #tpu.memory_space<vmem>>, vector<1x8x16xf32>
    %39 = vector.shape_cast %38 : vector<1x8x16xf32> to vector<8x16xf32>
    %cst_16 = arith.constant dense<0.000000e+00> : vector<256x16xf32>
    %40 = tpu.matmul %1, %39, %cst_16 {dimension_numbers = #tpu.dot_dimension_numbers<[1], [0], [0], [1], [0, 0, 1, 1], [], []>} : vector<256x8xf32>, vector<8x16xf32>, vector<256x16xf32> -> vector<256x16xf32>
    %41 = arith.addf %37, %40 : vector<256x16xf32>
    %c2 = arith.constant 2 : index
    %c0_17 = arith.constant 0 : index
    %c0_18 = arith.constant 0 : index
    %42 = vector.load %arg2[%c2, %c0_17, %c0_18] : memref<3x8x16xf32, #tpu.memory_space<vmem>>, vector<1x8x16xf32>
    %43 = vector.shape_cast %42 : vector<1x8x16xf32> to vector<8x16xf32>
    %cst_19 = arith.constant dense<0.000000e+00> : vector<256x16xf32>
    %44 = tpu.matmul %1, %43, %cst_19 {dimension_numbers = #tpu.dot_dimension_numbers<[1], [0], [0], [1], [0, 0, 1, 1], [], []>} : vector<256x8xf32>, vector<8x16xf32>, vector<256x16xf32> -> vector<256x16xf32>
    %cst_20 = arith.constant 0.000000e+00 : f32
    %45 = vector.broadcast %cst_20 : f32 to vector<1x16xf32>
    %46 = vector.extract_strided_slice %44 {offsets = [1, 0], sizes = [255, 16], strides = [1, 1]} : vector<256x16xf32> to vector<255x16xf32>
    %47 = tpu.concatenate %46, %45 in 0 : vector<255x16xf32>, vector<1x16xf32> -> vector<256x16xf32>
    %c1_i32_21 = arith.constant 1 : i32
    %48 = vector.broadcast %c1_i32_21 : i32 to vector<256x16xi32>
    %49 = arith.addi %18, %48 : vector<256x16xi32>
    %c0_i32_22 = arith.constant 0 : i32
    %50 = vector.broadcast %c0_i32_22 : i32 to vector<256x16xi32>
    %51 = arith.cmpi sge, %49, %50 : vector<256x16xi32>
    %c1_i32_23 = arith.constant 1 : i32
    %52 = vector.broadcast %c1_i32_23 : i32 to vector<256x16xi32>
    %53 = arith.addi %18, %52 : vector<256x16xi32>
    %c16_i32_24 = arith.constant 16 : i32
    %54 = vector.broadcast %c16_i32_24 : i32 to vector<256x16xi32>
    %55 = arith.cmpi slt, %53, %54 : vector<256x16xi32>
    %56 = arith.andi %51, %55 : vector<256x16xi1>
    %cst_25 = arith.constant 0.000000e+00 : f32
    %57 = vector.broadcast %cst_25 : f32 to vector<256x16xf32>
    %58 = arith.select %56, %47, %57 : vector<256x16xi1>, vector<256x16xf32>
    %59 = arith.addf %41, %58 : vector<256x16xf32>
    %c0_26 = arith.constant 0 : index
    %c0_27 = arith.constant 0 : index
    %60 = vector.load %arg3[%c0_26, %c0_27] : memref<1x16xf32, #tpu.memory_space<vmem>>, vector<1x16xf32>
    %61 = vector.broadcast %60 : vector<1x16xf32> to vector<256x16xf32>
    %62 = arith.addf %59, %61 : vector<256x16xf32>
    %c0_28 = arith.constant 0 : index
    %c0_29 = arith.constant 0 : index
    %63 = vector.load %arg11[%c0_28, %c0_29] : memref<256x16xf32, #tpu.memory_space<vmem>>, vector<256x16xf32>
    tpu.vector_store %arg11[%c0_28, %c0_29], %62 {strides = array<i32>} : memref<256x16xf32, #tpu.memory_space<vmem>>, vector<256x16xf32>,
    %c0_30 = arith.constant 0 : index
    %c0_31 = arith.constant 0 : index
    %64 = tpu.strided_load %arg11[%c0_30, %c0_31] {strides = array<i32: 2, 1>} : memref<256x16xf32, #tpu.memory_space<vmem>>, vector<128x16xf32>
    %c1_32 = arith.constant 1 : index
    %c0_33 = arith.constant 0 : index
    %65 = tpu.strided_load %arg11[%c1_32, %c0_33] {strides = array<i32: 2, 1>} : memref<256x16xf32, #tpu.memory_space<vmem>>, vector<128x16xf32>
    %66 = arith.maximumf %64, %65 : vector<128x16xf32>
    %cst_34 = arith.constant 0.000000e+00 : f32
    %67 = vector.broadcast %cst_34 : f32 to vector<128x16xf32>
    %68 = arith.maximumf %66, %67 : vector<128x16xf32>
    %cst_35 = arith.constant 0.000000e+00 : f32
    %69 = vector.broadcast %cst_35 : f32 to vector<128x32xf32>
    %c0_36 = arith.constant 0 : index
    %c0_37 = arith.constant 0 : index
    %c0_38 = arith.constant 0 : index
    %70 = vector.load %arg4[%c0_36, %c0_37, %c0_38] : memref<3x16x32xf32, #tpu.memory_space<vmem>>, vector<1x16x32xf32>
    %71 = vector.shape_cast %70 : vector<1x16x32xf32> to vector<16x32xf32>
    %cst_39 = arith.constant dense<0.000000e+00> : vector<128x32xf32>
    %72 = tpu.matmul %68, %71, %cst_39 {dimension_numbers = #tpu.dot_dimension_numbers<[1], [0], [0], [1], [0, 0, 1, 1], [], []>} : vector<128x16xf32>, vector<16x32xf32>, vector<128x32xf32> -> vector<128x32xf32>
    %73 = arith.addf %69, %72 : vector<128x32xf32>
    %c1_40 = arith.constant 1 : index
    %c0_41 = arith.constant 0 : index
    %c0_42 = arith.constant 0 : index
    %74 = vector.load %arg4[%c1_40, %c0_41, %c0_42] : memref<3x16x32xf32, #tpu.memory_space<vmem>>, vector<1x16x32xf32>
    %75 = vector.shape_cast %74 : vector<1x16x32xf32> to vector<16x32xf32>
    %cst_43 = arith.constant dense<0.000000e+00> : vector<128x32xf32>
    %76 = tpu.matmul %68, %75, %cst_43 {dimension_numbers = #tpu.dot_dimension_numbers<[1], [0], [0], [1], [0, 0, 1, 1], [], []>} : vector<128x16xf32>, vector<16x32xf32>, vector<128x32xf32> -> vector<128x32xf32>
    %cst_44 = arith.constant 0.000000e+00 : f32
    %77 = vector.broadcast %cst_44 : f32 to vector<1x32xf32>
    %78 = vector.extract_strided_slice %76 {offsets = [1, 0], sizes = [127, 32], strides = [1, 1]} : vector<128x32xf32> to vector<127x32xf32>
    %79 = tpu.concatenate %78, %77 in 0 : vector<127x32xf32>, vector<1x32xf32> -> vector<128x32xf32>
    %80 = arith.addf %73, %79 : vector<128x32xf32>
    %c2_45 = arith.constant 2 : index
    %c0_46 = arith.constant 0 : index
    %c0_47 = arith.constant 0 : index
    %81 = vector.load %arg4[%c2_45, %c0_46, %c0_47] : memref<3x16x32xf32, #tpu.memory_space<vmem>>, vector<1x16x32xf32>
    %82 = vector.shape_cast %81 : vector<1x16x32xf32> to vector<16x32xf32>
    %cst_48 = arith.constant dense<0.000000e+00> : vector<128x32xf32>
    %83 = tpu.matmul %68, %82, %cst_48 {dimension_numbers = #tpu.dot_dimension_numbers<[1], [0], [0], [1], [0, 0, 1, 1], [], []>} : vector<128x16xf32>, vector<16x32xf32>, vector<128x32xf32> -> vector<128x32xf32>
    %cst_49 = arith.constant 0.000000e+00 : f32
    %84 = vector.broadcast %cst_49 : f32 to vector<2x32xf32>
    %85 = vector.extract_strided_slice %83 {offsets = [2, 0], sizes = [126, 32], strides = [1, 1]} : vector<128x32xf32> to vector<126x32xf32>
    %86 = tpu.concatenate %85, %84 in 0 : vector<126x32xf32>, vector<2x32xf32> -> vector<128x32xf32>
    %87 = arith.addf %80, %86 : vector<128x32xf32>
    %c0_50 = arith.constant 0 : index
    %c0_51 = arith.constant 0 : index
    %88 = vector.load %arg5[%c0_50, %c0_51] : memref<1x32xf32, #tpu.memory_space<vmem>>, vector<1x32xf32>
    %89 = vector.broadcast %88 : vector<1x32xf32> to vector<128x32xf32>
    %90 = arith.addf %87, %89 : vector<128x32xf32>
    %91 = vector.extract_strided_slice %90 {offsets = [0, 0], sizes = [6, 32], strides = [1, 1]} : vector<128x32xf32> to vector<6x32xf32>
    %cst_52 = arith.constant dense<0xFF800000> : vector<32xf32>
    %92 = vector.multi_reduction <maximumf>, %91, %cst_52 [0] : vector<6x32xf32> to vector<32xf32>
    %93 = vector.shape_cast %92 : vector<32xf32> to vector<1x32xf32>
    %94 = vector.extract_strided_slice %90 {offsets = [8, 0], sizes = [6, 32], strides = [1, 1]} : vector<128x32xf32> to vector<6x32xf32>
    %cst_53 = arith.constant dense<0xFF800000> : vector<32xf32>
    %95 = vector.multi_reduction <maximumf>, %94, %cst_53 [0] : vector<6x32xf32> to vector<32xf32>
    %96 = vector.shape_cast %95 : vector<32xf32> to vector<1x32xf32>
    %97 = vector.extract_strided_slice %90 {offsets = [16, 0], sizes = [6, 32], strides = [1, 1]} : vector<128x32xf32> to vector<6x32xf32>
    %cst_54 = arith.constant dense<0xFF800000> : vector<32xf32>
    %98 = vector.multi_reduction <maximumf>, %97, %cst_54 [0] : vector<6x32xf32> to vector<32xf32>
    %99 = vector.shape_cast %98 : vector<32xf32> to vector<1x32xf32>
    %100 = vector.extract_strided_slice %90 {offsets = [24, 0], sizes = [6, 32], strides = [1, 1]} : vector<128x32xf32> to vector<6x32xf32>
    %cst_55 = arith.constant dense<0xFF800000> : vector<32xf32>
    %101 = vector.multi_reduction <maximumf>, %100, %cst_55 [0] : vector<6x32xf32> to vector<32xf32>
    %102 = vector.shape_cast %101 : vector<32xf32> to vector<1x32xf32>
    %103 = vector.extract_strided_slice %90 {offsets = [32, 0], sizes = [6, 32], strides = [1, 1]} : vector<128x32xf32> to vector<6x32xf32>
    %cst_56 = arith.constant dense<0xFF800000> : vector<32xf32>
    %104 = vector.multi_reduction <maximumf>, %103, %cst_56 [0] : vector<6x32xf32> to vector<32xf32>
    %105 = vector.shape_cast %104 : vector<32xf32> to vector<1x32xf32>
    %106 = vector.extract_strided_slice %90 {offsets = [40, 0], sizes = [6, 32], strides = [1, 1]} : vector<128x32xf32> to vector<6x32xf32>
    %cst_57 = arith.constant dense<0xFF800000> : vector<32xf32>
    %107 = vector.multi_reduction <maximumf>, %106, %cst_57 [0] : vector<6x32xf32> to vector<32xf32>
    %108 = vector.shape_cast %107 : vector<32xf32> to vector<1x32xf32>
    %109 = vector.extract_strided_slice %90 {offsets = [48, 0], sizes = [6, 32], strides = [1, 1]} : vector<128x32xf32> to vector<6x32xf32>
    %cst_58 = arith.constant dense<0xFF800000> : vector<32xf32>
    %110 = vector.multi_reduction <maximumf>, %109, %cst_58 [0] : vector<6x32xf32> to vector<32xf32>
    %111 = vector.shape_cast %110 : vector<32xf32> to vector<1x32xf32>
    %112 = vector.extract_strided_slice %90 {offsets = [56, 0], sizes = [6, 32], strides = [1, 1]} : vector<128x32xf32> to vector<6x32xf32>
    %cst_59 = arith.constant dense<0xFF800000> : vector<32xf32>
    %113 = vector.multi_reduction <maximumf>, %112, %cst_59 [0] : vector<6x32xf32> to vector<32xf32>
    %114 = vector.shape_cast %113 : vector<32xf32> to vector<1x32xf32>
    %115 = vector.extract_strided_slice %90 {offsets = [64, 0], sizes = [6, 32], strides = [1, 1]} : vector<128x32xf32> to vector<6x32xf32>
    %cst_60 = arith.constant dense<0xFF800000> : vector<32xf32>
    %116 = vector.multi_reduction <maximumf>, %115, %cst_60 [0] : vector<6x32xf32> to vector<32xf32>
    %117 = vector.shape_cast %116 : vector<32xf32> to vector<1x32xf32>
    %118 = vector.extract_strided_slice %90 {offsets = [72, 0], sizes = [6, 32], strides = [1, 1]} : vector<128x32xf32> to vector<6x32xf32>
    %cst_61 = arith.constant dense<0xFF800000> : vector<32xf32>
    %119 = vector.multi_reduction <maximumf>, %118, %cst_61 [0] : vector<6x32xf32> to vector<32xf32>
    %120 = vector.shape_cast %119 : vector<32xf32> to vector<1x32xf32>
    %121 = vector.extract_strided_slice %90 {offsets = [80, 0], sizes = [6, 32], strides = [1, 1]} : vector<128x32xf32> to vector<6x32xf32>
    %cst_62 = arith.constant dense<0xFF800000> : vector<32xf32>
    %122 = vector.multi_reduction <maximumf>, %121, %cst_62 [0] : vector<6x32xf32> to vector<32xf32>
    %123 = vector.shape_cast %122 : vector<32xf32> to vector<1x32xf32>
    %124 = vector.extract_strided_slice %90 {offsets = [88, 0], sizes = [6, 32], strides = [1, 1]} : vector<128x32xf32> to vector<6x32xf32>
    %cst_63 = arith.constant dense<0xFF800000> : vector<32xf32>
    %125 = vector.multi_reduction <maximumf>, %124, %cst_63 [0] : vector<6x32xf32> to vector<32xf32>
    %126 = vector.shape_cast %125 : vector<32xf32> to vector<1x32xf32>
    %127 = vector.extract_strided_slice %90 {offsets = [96, 0], sizes = [6, 32], strides = [1, 1]} : vector<128x32xf32> to vector<6x32xf32>
    %cst_64 = arith.constant dense<0xFF800000> : vector<32xf32>
    %128 = vector.multi_reduction <maximumf>, %127, %cst_64 [0] : vector<6x32xf32> to vector<32xf32>
    %129 = vector.shape_cast %128 : vector<32xf32> to vector<1x32xf32>
    %130 = vector.extract_strided_slice %90 {offsets = [104, 0], sizes = [6, 32], strides = [1, 1]} : vector<128x32xf32> to vector<6x32xf32>
    %cst_65 = arith.constant dense<0xFF800000> : vector<32xf32>
    %131 = vector.multi_reduction <maximumf>, %130, %cst_65 [0] : vector<6x32xf32> to vector<32xf32>
    %132 = vector.shape_cast %131 : vector<32xf32> to vector<1x32xf32>
    %133 = vector.extract_strided_slice %90 {offsets = [112, 0], sizes = [6, 32], strides = [1, 1]} : vector<128x32xf32> to vector<6x32xf32>
    %cst_66 = arith.constant dense<0xFF800000> : vector<32xf32>
    %134 = vector.multi_reduction <maximumf>, %133, %cst_66 [0] : vector<6x32xf32> to vector<32xf32>
    %135 = vector.shape_cast %134 : vector<32xf32> to vector<1x32xf32>
    %136 = vector.extract_strided_slice %90 {offsets = [120, 0], sizes = [6, 32], strides = [1, 1]} : vector<128x32xf32> to vector<6x32xf32>
    %cst_67 = arith.constant dense<0xFF800000> : vector<32xf32>
    %137 = vector.multi_reduction <maximumf>, %136, %cst_67 [0] : vector<6x32xf32> to vector<32xf32>
    %138 = vector.shape_cast %137 : vector<32xf32> to vector<1x32xf32>
    %139 = tpu.concatenate %93, %96, %99, %102, %105, %108, %111, %114, %117, %120, %123, %126, %129, %132, %135, %138 in 0 : vector<1x32xf32>, vector<1x32xf32>, vector<1x32xf32>, vector<1x32xf32>, vector<1x32xf32>, vector<1x32xf32>, vector<1x32xf32>, vector<1x32xf32>, vector<1x32xf32>, vector<1x32xf32>, vector<1x32xf32>, vector<1x32xf32>, vector<1x32xf32>, vector<1x32xf32>, vector<1x32xf32>, vector<1x32xf32> -> vector<16x32xf32>
    %cst_68 = arith.constant 0.000000e+00 : f32
    %140 = vector.broadcast %cst_68 : f32 to vector<16x32xf32>
    %141 = arith.maximumf %139, %140 : vector<16x32xf32>
    %c0_69 = arith.constant 0 : index
    %c0_70 = arith.constant 0 : index
    %142 = vector.load %arg6[%c0_69, %c0_70] : memref<32x16xf32, #tpu.memory_space<vmem>>, vector<32x16xf32>
    %cst_71 = arith.constant dense<0.000000e+00> : vector<16x16xf32>
    %143 = tpu.matmul %141, %142, %cst_71 {dimension_numbers = #tpu.dot_dimension_numbers<[1], [0], [0], [1], [0, 0, 1, 1], [], []>} : vector<16x32xf32>, vector<32x16xf32>, vector<16x16xf32> -> vector<16x16xf32>
    %c0_72 = arith.constant 0 : index
    %c0_73 = arith.constant 0 : index
    %144 = vector.load %arg7[%c0_72, %c0_73] : memref<1x16xf32, #tpu.memory_space<vmem>>, vector<1x16xf32>
    %145 = vector.broadcast %144 : vector<1x16xf32> to vector<16x16xf32>
    %146 = arith.addf %143, %145 : vector<16x16xf32>
    %cst_74 = arith.constant 0.000000e+00 : f32
    %147 = vector.broadcast %cst_74 : f32 to vector<16x16xf32>
    %148 = arith.maximumf %146, %147 : vector<16x16xf32>
    %c0_75 = arith.constant 0 : index
    %c0_76 = arith.constant 0 : index
    %149 = vector.load %arg8[%c0_75, %c0_76] : memref<16x128xf32, #tpu.memory_space<vmem>>, vector<16x128xf32>
    %cst_77 = arith.constant dense<0.000000e+00> : vector<16x128xf32>
    %150 = tpu.matmul %148, %149, %cst_77 {dimension_numbers = #tpu.dot_dimension_numbers<[1], [0], [0], [1], [0, 0, 1, 1], [], []>} : vector<16x16xf32>, vector<16x128xf32>, vector<16x128xf32> -> vector<16x128xf32>
    %c0_78 = arith.constant 0 : index
    %c0_79 = arith.constant 0 : index
    %151 = vector.load %arg9[%c0_78, %c0_79] : memref<1x128xf32, #tpu.memory_space<vmem>>, vector<1x128xf32>
    %152 = vector.broadcast %151 : vector<1x128xf32> to vector<16x128xf32>
    %153 = arith.addf %150, %152 : vector<16x128xf32>
    %c0_80 = arith.constant 0 : index
    %c0_81 = arith.constant 0 : index
    %154 = vector.load %arg10[%c0_80, %c0_81] : memref<16x128xf32, #tpu.memory_space<vmem>>, vector<16x128xf32>
    tpu.vector_store %arg10[%c0_80, %c0_81], %153 {strides = array<i32>} : memref<16x128xf32, #tpu.memory_space<vmem>>, vector<16x128xf32>,
    return
  }
  func.func @transform_0(%arg0: i32) -> (i32, i32, i32) {
    %c0_i32 = arith.constant 0 : i32
    %c0_i32_0 = arith.constant 0 : i32
    %c0_i32_1 = arith.constant 0 : i32
    return %arg0, %c0_i32, %c0_i32_0 : i32, i32, i32
  }
  func.func @transform_1(%arg0: i32) -> (i32, i32, i32) {
    %c0_i32 = arith.constant 0 : i32
    %c0_i32_0 = arith.constant 0 : i32
    %c0_i32_1 = arith.constant 0 : i32
    %c0_i32_2 = arith.constant 0 : i32
    return %c0_i32, %c0_i32_0, %c0_i32_1 : i32, i32, i32
  }
  func.func @transform_2(%arg0: i32) -> (i32, i32) {
    %c0_i32 = arith.constant 0 : i32
    %c0_i32_0 = arith.constant 0 : i32
    %c0_i32_1 = arith.constant 0 : i32
    return %c0_i32, %c0_i32_0 : i32, i32
  }
  func.func @transform_3(%arg0: i32) -> (i32, i32, i32) {
    %c0_i32 = arith.constant 0 : i32
    %c0_i32_0 = arith.constant 0 : i32
    %c0_i32_1 = arith.constant 0 : i32
    %c0_i32_2 = arith.constant 0 : i32
    return %c0_i32, %c0_i32_0, %c0_i32_1 : i32, i32, i32
  }
  func.func @transform_4(%arg0: i32) -> (i32, i32) {
    %c0_i32 = arith.constant 0 : i32
    %c0_i32_0 = arith.constant 0 : i32
    %c0_i32_1 = arith.constant 0 : i32
    return %c0_i32, %c0_i32_0 : i32, i32
  }
  func.func @transform_5(%arg0: i32) -> (i32, i32) {
    %c0_i32 = arith.constant 0 : i32
    %c0_i32_0 = arith.constant 0 : i32
    %c0_i32_1 = arith.constant 0 : i32
    return %c0_i32, %c0_i32_0 : i32, i32
  }
  func.func @transform_6(%arg0: i32) -> (i32, i32) {
    %c0_i32 = arith.constant 0 : i32
    %c0_i32_0 = arith.constant 0 : i32
    %c0_i32_1 = arith.constant 0 : i32
    return %c0_i32, %c0_i32_0 : i32, i32
  }
  func.func @transform_7(%arg0: i32) -> (i32, i32) {
    %c0_i32 = arith.constant 0 : i32
    %c0_i32_0 = arith.constant 0 : i32
    %c0_i32_1 = arith.constant 0 : i32
    return %c0_i32, %c0_i32_0 : i32, i32
  }
  func.func @transform_8(%arg0: i32) -> (i32, i32) {
    %c0_i32 = arith.constant 0 : i32
    %c0_i32_0 = arith.constant 0 : i32
    %c0_i32_1 = arith.constant 0 : i32
    return %c0_i32, %c0_i32_0 : i32, i32
  }
  func.func @transform_9(%arg0: i32) -> (i32, i32) {
    %c0_i32 = arith.constant 0 : i32
    %c0_i32_0 = arith.constant 0 : i32
    return %arg0, %c0_i32 : i32, i32
  }
}

</mosaic_0001>

<bundles_post_ra>
// kernel: _lambda_.1
= control target key start
LH: loop header
LB: loop body
LE: loop exit
PB: predicated region body
PF: predicated region fallthrough
CT: control target
= control target key end

     0   :  { %s2990_s30 = smov 0   ;;  %s3779_s0 = inlined_call_operand.vmem [shape: f32[32,16,8], index: 0, kind: input, shape index: {}]   ;;  %s3780_s1 = inlined_call_operand.vmem [shape: f32[3,8,16], index: 1, kind: input, shape index: {}]   ;;  %s3781_s2 = inlined_call_operand.vmem [shape: f32[1,16], index: 2, kind: input, shape index: {}]   ;;  %s3782_s3 = inlined_call_operand.vmem [shape: f32[3,16,32], index: 3, kind: input, shape index: {}]   ;;  %s3783_s4 = inlined_call_operand.vmem [shape: f32[1,32], index: 4, kind: input, shape index: {}]   ;;  %s3784_s5 = inlined_call_operand.vmem [shape: f32[32,16], index: 5, kind: input, shape index: {}]   ;;  %s3785_s6 = inlined_call_operand.vmem [shape: f32[1,16], index: 6, kind: input, shape index: {}]   ;;  %s3786_s7 = inlined_call_operand.vmem [shape: f32[16,128], index: 7, kind: input, shape index: {}]   ;;  %s3787_s8 = inlined_call_operand.vmem [shape: f32[1,128], index: 8, kind: input, shape index: {}]   ;;  %s3788_s9 = inlined_call_operand.vmem [shape: f32[32,128], index: 9, kind: output, shape index: {}]  }
   0x1 LB: > { %s2749_s10 = sadd.s32 4294967295, %s2938_s30   ;;  %p2753_p0 = scmp.ge.s32.totalorder %s2938_s30, 1  ;;  %s2938_s30 = sphi %s2990_s30, %s19_s30  }
   0x2   : > { %p289_p1 = scmp.lt.s32.totalorder %s2938_s30, 3 }
   0x4   : > { %p290_p2 = pnand %p2753_p0, %p289_p1 }
   0x5   : > { %s2754_s13 = sshll.u32 (!%p290_p2), %s2749_s10, 4  ;;  %s2757_s16 = sshll.u32 (!%p290_p2), %s2749_s10, 1 }
   0x6   : > { %293 = sbr.rel (%p290_p2) target bundleno = 987 (0x3db), region = 56  ;;  %p327_p3 = scmp.lt.s32.totalorder (!%p290_p2), %s2754_s13, 31 }
   0x7   : > { %p334_p4 = scmp.lt.s32.totalorder (!%p290_p2), %s2757_s16, 3 }
   0xb   : > { %v788_v0 = vld [vmem:[%s3780_s1] sm:$0xff]  ;;  %v2824_v1 = vld [vmem:[%s3780_s1 + $0x10] sm:$0xff]  ;;  %v2791_v2 = vld [vmem:[%s3780_s1 + $0x8] sm:$0xff]  ;;  %s3790_s13 = smov (!%p327_p3, %s2754_s13), 31  ;;  %vm789_vm0 = vcmask 64512   ;;  %vm1031_vm1 = vcmask 1040384   ;;  %v371_v43 = vlaneseq }
   0xc   : > { %901 = vmatpush.msra.mxu0 %v788_v0  ;;  %2916 = vmatpush.msra.mxu1 %v788_v0  ;;  %s2915_s18 = sshll.u32 %s3790_s13, 4  ;;  %v2858_v59 = vld [vmem:[%s3782_s3 + $0x18] sm:$0xff]  ;;  %v2892_v60 = vld [vmem:[%s3782_s3 + $0x28] sm:$0xff]  ;;  %v2857_v61 = vld [vmem:[%s3782_s3 + $0x10] sm:$0xff]  ;;  %vm1614_vm3 = vcmask 1046528   ;;  %vm1939_vm4 = vcmask 130048  }
   0xd   : > { %2917 = vmatpush.msra.mxu2 %v788_v0  ;;  %2918 = vmatpush.msra.mxu3 %v788_v0  ;;  %s3012_s21 = scalar_lea.vmem %s3779_s0, %s2915_s18  ;;  %v3162_v49 = vshrl.u32 %v371_v43, 7  ;;  %v2891_v62 = vld [vmem:[%s3782_s3 + $0x20] sm:$0xff]  ;;  %s3792_s16 = smov (!%p334_p4, %s2757_s16), 3 }
   0xe   : > { %1337 = vmatpush.msrb.mxu1 %v2791_v2  ;;  %v339_v3 = vld [vmem:[%s3012_s21] sm:$0xff]  ;;  %v3016_v4 = vld [vmem:[%s3012_s21 + $0xa8] sm:$0xff]  ;;  %v3027_v6 = vld [vmem:[%s3012_s21 + $0xd8] sm:$0xff]  ;;  %2331 = vmatpush.msrb.mxu0 %v2892_v60  ;;  %s2758_s17 = sshll.u32 %s3792_s16, 3 }
   0xf   : > { %1484 = vmatpush.msrb.mxu2 %v2824_v1  ;;  %v3019_v5 = vld [vmem:[%s3012_s21 + $0xc0] sm:$0xff]  ;;  %2759 = vmatmul.msk.f32.vlgmr.msra.gmra.mxu0 %vm789_vm0, %v339_v3  ;;  %v340_v7 = vld [vmem:[%s3012_s21 + $0x8] sm:$0xff]  ;;  %v3033_v8 = vld [vmem:[%s3012_s21 + $0xb0] sm:$0xff]  ;;  %v408_v51 = vand.u32 15, %v3162_v49  ;;  %v373_v0 = vadd.s32 8, %v3162_v49  ;;  %s337_s22 = scalar_lea.vmem %s3788_s9, %s2758_s17 }
  0x10   : > { %2780 = vmatmul.msk.f32.vlgmr.msra.gmra.mxu1 %vm789_vm0, %v3016_v4  ;;  %2783 = vmatmul.msk.f32.vlgmr.msra.gmra.mxu2 %vm789_vm0, %v3019_v5  ;;  %v3036_v9 = vld [vmem:[%s3012_s21 + $0xc8] sm:$0xff]  ;;  %v341_v10 = vld [vmem:[%s3012_s21 + $0x10] sm:$0xff]  ;;  %v3045_v11 = vld [vmem:[%s3012_s21 + $0xb8] sm:$0xff] }
  0x11   : > { %2786 = vmatmul.msk.f32.vlgmr.msra.gmra.mxu3 %vm789_vm0, %v3027_v6  ;;  %v3048_v12 = vld [vmem:[%s3012_s21 + $0xd0] sm:$0xff]  ;;  %v342_v13 = vld [vmem:[%s3012_s21 + $0x18] sm:$0xff]  ;;  %v343_v14 = vld [vmem:[%s3012_s21 + $0x20] sm:$0xff]  ;;  %v1128_v54 = vadd.s32 4294967295, %v408_v51  ;;  %2332 = vmatpush.msrb.mxu0 %v2891_v62  ;;  %v375_v51 = vadd.s32 24, %v3162_v49 }
  0x12   : > { %v344_v15 = vld [vmem:[%s3012_s21 + $0x28] sm:$0xff]  ;;  %v345_v16 = vld [vmem:[%s3012_s21 + $0x30] sm:$0xff]  ;;  %v346_v17 = vld [vmem:[%s3012_s21 + $0x38] sm:$0xff]  ;;  %2134 = vmatpush.msrb.mxu3 %v2858_v59 }
  0x13   : > { %v347_v18 = vld [vmem:[%s3012_s21 + $0x40] sm:$0xff]  ;;  %v348_v19 = vld [vmem:[%s3012_s21 + $0x48] sm:$0xff]  ;;  %v349_v20 = vld [vmem:[%s3012_s21 + $0x50] sm:$0xff]  ;;  %vm1160_vm2 = vcmp.ge.s32.totalorder %v1128_v54, 0 }
  0x14   : > { %v350_v21 = vld [vmem:[%s3012_s21 + $0x58] sm:$0xff]  ;;  %v351_v22 = vld [vmem:[%s3012_s21 + $0x60] sm:$0xff]  ;;  %v352_v23 = vld [vmem:[%s3012_s21 + $0x68] sm:$0xff]  ;;  %2135 = vmatpush.msrb.mxu3 %v2857_v61  ;;  %v429_v61 = vand.u32 15, %v375_v51 }
  0x15   : > { %v353_v24 = vld [vmem:[%s3012_s21 + $0x70] sm:$0xff]  ;;  %v354_v25 = vld [vmem:[%s3012_s21 + $0x78] sm:$0xff]  ;;  %v355_v28 = vld [vmem:[%s3012_s21 + $0x80] sm:$0xff] }
  0x16   : > { %v3115_v29 = vld [vmem:[%s3012_s21 + $0xe0] sm:$0xff]  ;;  %v356_v33 = vld [vmem:[%s3012_s21 + $0x88] sm:$0xff]  ;;  %v357_v40 = vld [vmem:[%s3012_s21 + $0x90] sm:$0xff] }
  0x17   : > { %2760 = vmatmul.msk.f32.gmra.mxu0 %vm789_vm0, %v340_v7  ;;  %v3130_v34 = vld [vmem:[%s3012_s21 + $0xe8] sm:$0xff]  ;;  %v3149_v42 = vld [vmem:[%s3012_s21 + $0xf0] sm:$0xff]  ;;  %v3160_v48 = vld [vmem:[%s3012_s21 + $0x98] sm:$0xff] }
  0x18   : > { %2781 = vmatmul.msk.f32.gmra.mxu1 %vm789_vm0, %v3033_v8  ;;  %2784 = vmatmul.msk.f32.gmra.mxu2 %vm789_vm0, %v3036_v9  ;;  %v3174_v52 = vld [vmem:[%s3012_s21 + $0xf8] sm:$0xff]  ;;  %v3183_v58 = vld [vmem:[%s3012_s21 + $0xa0] sm:$0xff] }
  0x19   : > { %2787 = vmatmul.msk.f32.gmra.mxu3 %vm789_vm0, %v3115_v29 }
  0x1f   : > { %2761 = vmatmul.msk.f32.gmra.mxu0 %vm789_vm0, %v341_v10 }
  0x20   : > { %2782 = vmatmul.msk.f32.gmra.mxu1 %vm789_vm0, %v3045_v11  ;;  %2785 = vmatmul.msk.f32.gmra.mxu2 %vm789_vm0, %v3048_v12 }
  0x21   : > { %2788 = vmatmul.msk.f32.gmra.mxu3 %vm789_vm0, %v3130_v34 }
  0x27   : > { %2762 = vmatmul.msk.f32.gmra.mxu0 %vm789_vm0, %v342_v13 }
  0x28   : > { %2792 = vmatmul.msk.f32.vlgmr.msrb.gmra.mxu1 %vm789_vm0, %v339_v3  ;;  %2825 = vmatmul.msk.f32.vlgmr.msrb.gmra.mxu2 %vm789_vm0, %v339_v3  ;;  %v374_v3 = vadd.s32 16, %v3162_v49 }
  0x29   : > { %2789 = vmatmul.msk.f32.gmra.mxu3 %vm789_vm0, %v3149_v42 }
  0x2f   : > { %2763 = vmatmul.msk.f32.gmra.mxu0 %vm789_vm0, %v343_v14 }
  0x30   : > { %2793 = vmatmul.msk.f32.gmra.mxu1 %vm789_vm0, %v340_v7  ;;  %2826 = vmatmul.msk.f32.gmra.mxu2 %vm789_vm0, %v340_v7 }
  0x31   : > { %2790 = vmatmul.msk.f32.gmra.mxu3 %vm789_vm0, %v3174_v52 }
  0x37   : > { %2764 = vmatmul.msk.f32.gmra.mxu0 %vm789_vm0, %v344_v15 }
  0x38   : > { %2794 = vmatmul.msk.f32.gmra.mxu1 %vm789_vm0, %v341_v10  ;;  %2827 = vmatmul.msk.f32.gmra.mxu2 %vm789_vm0, %v341_v10 }
  0x3f   : > { %2765 = vmatmul.msk.f32.gmra.mxu0 %vm789_vm0, %v345_v16 }
  0x40   : > { %2795 = vmatmul.msk.f32.gmra.mxu1 %vm789_vm0, %v342_v13  ;;  %2828 = vmatmul.msk.f32.gmra.mxu2 %vm789_vm0, %v342_v13 }
  0x47   : > { %2766 = vmatmul.msk.f32.gmra.mxu0 %vm789_vm0, %v346_v17 }
  0x48   : > { %2796 = vmatmul.msk.f32.gmra.mxu1 %vm789_vm0, %v343_v14  ;;  %2829 = vmatmul.msk.f32.gmra.mxu2 %vm789_vm0, %v343_v14 }
  0x4f   : > { %2767 = vmatmul.msk.f32.gmra.mxu0 %vm789_vm0, %v347_v18 }
  0x50   : > { %2797 = vmatmul.msk.f32.gmra.mxu1 %vm789_vm0, %v344_v15  ;;  %2830 = vmatmul.msk.f32.gmra.mxu2 %vm789_vm0, %v344_v15  ;;  %v415_v15 = vand.u32 15, %v373_v0 }
  0x57   : > { %2768 = vmatmul.msk.f32.gmra.mxu0 %vm789_vm0, %v348_v19 }
  0x58   : > { %2798 = vmatmul.msk.f32.gmra.mxu1 %vm789_vm0, %v345_v16  ;;  %2831 = vmatmul.msk.f32.gmra.mxu2 %vm789_vm0, %v345_v16 }
  0x5f   : > { %2769 = vmatmul.msk.f32.gmra.mxu0 %vm789_vm0, %v349_v20 }
  0x60   : > { %2799 = vmatmul.msk.f32.gmra.mxu1 %vm789_vm0, %v346_v17  ;;  %2832 = vmatmul.msk.f32.gmra.mxu2 %vm789_vm0, %v346_v17  ;;  %v3209_v17 = vld [vmem:[%s3781_s2] ss:$0 sm:$0xff] }
  0x67   : > { %2770 = vmatmul.msk.f32.gmra.mxu0 %vm789_vm0, %v350_v21 }
  0x68   : > { %2800 = vmatmul.msk.f32.gmra.mxu1 %vm789_vm0, %v347_v18  ;;  %2833 = vmatmul.msk.f32.gmra.mxu2 %vm789_vm0, %v347_v18 }
  0x6f   : > { %2771 = vmatmul.msk.f32.gmra.mxu0 %vm789_vm0, %v351_v22 }
  0x70   : > { %2801 = vmatmul.msk.f32.gmra.mxu1 %vm789_vm0, %v348_v19  ;;  %2834 = vmatmul.msk.f32.gmra.mxu2 %vm789_vm0, %v348_v19 }
  0x77   : > { %2772 = vmatmul.msk.f32.gmra.mxu0 %vm789_vm0, %v352_v23 }
  0x78   : > { %2802 = vmatmul.msk.f32.gmra.mxu1 %vm789_vm0, %v349_v20  ;;  %2835 = vmatmul.msk.f32.gmra.mxu2 %vm789_vm0, %v349_v20 }
  0x7f   : > { %2773 = vmatmul.msk.f32.gmra.mxu0 %vm789_vm0, %v353_v24 }
  0x80   : > { %2803 = vmatmul.msk.f32.gmra.mxu1 %vm789_vm0, %v350_v21  ;;  %2836 = vmatmul.msk.f32.gmra.mxu2 %vm789_vm0, %v350_v21  ;;  %v422_v21 = vand.u32 15, %v374_v3  ;;  %v1714_v3 = vadd.s32 1, %v429_v61 }
  0x82   : > { %vm1778_vm7 = vcmp.lt.s32.totalorder %v1714_v3, 16 }
  0x87   : > { %2774 = vmatmul.msk.f32.gmra.mxu0 %vm789_vm0, %v354_v25 }
  0x88   : > { %2804 = vmatmul.msk.f32.gmra.mxu1 %vm789_vm0, %v351_v22  ;;  %2837 = vmatmul.msk.f32.gmra.mxu2 %vm789_vm0, %v351_v22  ;;  %v1712_v22 = vadd.s32 1, %v415_v15 }
  0x8a   : > { %vm1776_vm5 = vcmp.lt.s32.totalorder %v1712_v22, 16 }
  0x8c   : > { %v3107_v26 = vpop.f32.mrf.mxu0 }
  0x8d   : > { %v3109_v27 = vpop.f32.mrf.mxu1  ;;  %v1032_v53 = vrot.slane %v3107_v26, 7  ;;  %v1130_v26 = vadd.s32 4294967295, %v422_v21 }
  0x8f   : > { %2775 = vmatmul.msk.f32.gmra.mxu0 %vm789_vm0, %v355_v28  ;;  %v1127_v63 = vsel %vm1031_vm1, 0.0, %v1032_v53  ;;  %vm1162_vm6 = vcmp.ge.s32.totalorder %v1130_v26, 0  ;;  %v377_v26 = vadd.s32 40, %v3162_v49 }
  0x90   : > { %2805 = vmatmul.msk.f32.gmra.mxu1 %vm789_vm0, %v352_v23  ;;  %2838 = vmatmul.msk.f32.gmra.mxu2 %vm789_vm0, %v352_v23  ;;  %v1256_v1 = vsel %vm1160_vm2, %v1127_v63, 0.0 }
  0x93   : > { %v3120_v30 = vpop.f32.mrf.mxu2 }
  0x94   : > { %v3122_v31 = vpop.f32.mrf.mxu0  ;;  %v1079_v36 = vrot.slane %v3120_v30, 7 }
  0x95   : > { %v3124_v32 = vpop.f32.mrf.mxu1  ;;  %v1033_v19 = vrot.slane %v3122_v31, 7 }
  0x97   : > { %2776 = vmatmul.msk.f32.gmra.mxu0 %vm789_vm0, %v356_v33 }
  0x98   : > { %2806 = vmatmul.msk.f32.gmra.mxu1 %vm789_vm0, %v353_v24  ;;  %2839 = vmatmul.msk.f32.gmra.mxu2 %vm789_vm0, %v353_v24 }
  0x9b   : > { %v978_v35 = vpop.f32.mrf.mxu2 }
  0x9c   : > { %v1081_v37 = vrot.slane %v978_v35, 7  ;;  %v3136_v38 = vpop.f32.mrf.mxu0 }
  0x9d   : > { %v3138_v39 = vpop.f32.mrf.mxu1  ;;  %v1035_v24 = vrot.slane %v3136_v38, 7 }
  0x9e   : > { %v3144_v41 = vsel %vm1031_vm1, %v1079_v36, %v1081_v37 }
  0x9f   : > { %2777 = vmatmul.msk.f32.gmra.mxu0 %vm789_vm0, %v357_v40 }
  0xa0   : > { %2807 = vmatmul.msk.f32.gmra.mxu1 %vm789_vm0, %v354_v25  ;;  %2840 = vmatmul.msk.f32.gmra.mxu2 %vm789_vm0, %v354_v25  ;;  %v1034_v25 = vsel %vm1031_vm1, %v1032_v53, %v1033_v19 }
  0xa3   : > { %v3154_v44 = vpop.f32.mrf.mxu2 }
  0xa4   : > { %v1083_v45 = vrot.slane %v3154_v44, 7  ;;  %v3157_v46 = vpop.f32.mrf.mxu0  ;;  %v401_v44 = vadd.s32 232, %v3162_v49 }
  0xa5   : > { %v1339_v47 = vpop.f32.mrf.mxu1 }
  0xa6   : > { %v3167_v50 = vsel %vm1031_vm1, %v1081_v37, %v1083_v45  ;;  %v1435_v16 = vadd.f32 %v1339_v47, %v1256_v1  ;;  %v1037_v1 = vrot.slane %v3157_v46, 7 }
  0xa7   : > { %2778 = vmatmul.msk.f32.gmra.mxu0 %vm789_vm0, %v3160_v48 }
  0xa8   : > { %2808 = vmatmul.msk.f32.gmra.mxu1 %vm789_vm0, %v355_v28  ;;  %2841 = vmatmul.msk.f32.gmra.mxu2 %vm789_vm0, %v355_v28  ;;  %v1038_v15 = vsel %vm1031_vm1, %v1035_v24, %v1037_v1 }
  0xab   : > { %v1486_v55 = vpop.f32.mrf.mxu2 }
  0xac   : > { %v3180_v56 = vpop.f32.mrf.mxu0  ;;  %v1615_v7 = vrot.slane %v1486_v55, 1  ;;  %v376_v55 = vadd.s32 32, %v3162_v49 }
  0xad   : > { %v1342_v57 = vpop.f32.mrf.mxu1 }
  0xae   : > { %v1436_v35 = vadd.f32 %v1342_v57, %v1034_v25  ;;  %v436_v0 = vand.u32 15, %v376_v55 }
  0xaf   : > { %2779 = vmatmul.msk.f32.gmra.mxu0 %vm789_vm0, %v3183_v58 }
  0xb0   : > { %2809 = vmatmul.msk.f32.gmra.mxu1 %vm789_vm0, %v356_v33  ;;  %2842 = vmatmul.msk.f32.gmra.mxu2 %vm789_vm0, %v356_v33 }
  0xb3   : > { %v1489_v2 = vpop.f32.mrf.mxu2 }
  0xb4   : > { %v1616_v10 = vrot.slane %v1489_v2, 1  ;;  %v3204_v13 = vpop.f32.mrf.mxu0 }
  0xb5   : > { %v1345_v14 = vpop.f32.mrf.mxu1 }
  0xb6   : > { %v1617_v18 = vsel %vm1614_vm3, %v1615_v7, %v1616_v10 }
  0xb7   : > { %v1871_v20 = vadd.f32 %v1617_v18, %v1435_v16 }
  0xb8   : > { %2810 = vmatmul.msk.f32.gmra.mxu1 %vm789_vm0, %v357_v40  ;;  %2843 = vmatmul.msk.f32.gmra.mxu2 %vm789_vm0, %v357_v40  ;;  %v1036_v40 = vsel %vm1031_vm1, %v1033_v19, %v1035_v24 }
  0xb9   : > { %v1907_v23 = vadd.f32 %v3209_v17, %v1871_v20  ;;  %v1258_v53 = vsel %vm1162_vm6, %v1036_v40, 0.0 }
  0xba   : > { %v1437_v62 = vadd.f32 %v1345_v14, %v1258_v53  ;;  %v1039_v14 = vrot.slane %v3180_v56, 7 }
  0xbb   : > { %1940 = vst.msk [vmem:[#allocation2] sm:$0xff] %vm1939_vm4, %v1907_v23  ;;  %v1492_v28 = vpop.f32.mrf.mxu2 }
  0xbc   : > { %v1618_v33 = vrot.slane %v1492_v28, 1  ;;  %v3220_v43 = vpop.f32.mrf.mxu0  ;;  %v1040_v25 = vsel %vm1031_vm1, %v1037_v1, %v1039_v14 }
  0xbd   : > { %v1348_v31 = vpop.f32.mrf.mxu1 }
  0xbe   : > { %v1619_v37 = vsel %vm1614_vm3, %v1616_v10, %v1618_v33  ;;  %v1132_v10 = vadd.s32 4294967295, %v436_v0  ;;  %v1438_v22 = vadd.f32 %v1348_v31, %v1038_v15 }
  0xbf   : > { %v1840_v47 = vsel %vm1776_vm5, %v1619_v37, 0.0 }
  0xc0   : > { %2811 = vmatmul.msk.f32.gmra.mxu1 %vm789_vm0, %v3160_v48  ;;  %v1872_v38 = vadd.f32 %v1840_v47, %v1436_v35  ;;  %2844 = vmatmul.msk.f32.gmra.mxu2 %vm789_vm0, %v3160_v48  ;;  %vm1164_vm8 = vcmp.ge.s32.totalorder %v1132_v10, 0  ;;  %v378_v35 = vadd.s32 48, %v3162_v49  ;;  %v443_v47 = vand.u32 15, %v377_v26 }
  0xc1   : > { %v1260_v28 = vsel %vm1164_vm8, %v1040_v25, 0.0 }
  0xc2   : > { %v1908_v54 = vadd.f32 %v3209_v17, %v1872_v38  ;;  %v450_v53 = vand.u32 15, %v378_v35 }
  0xc3   : > { %v1495_v57 = vpop.f32.mrf.mxu2 }
  0xc4   : > { %1941 = vst.msk [vmem:[#allocation2 + $0x8] sm:$0xff] %vm1939_vm4, %v1908_v54  ;;  %v1620_v59 = vrot.slane %v1495_v57, 1  ;;  %v3235_v2 = vpop.f32.mrf.mxu0  ;;  %v1041_v54 = vrot.slane %v3204_v13, 7  ;;  %v1716_v57 = vadd.s32 1, %v443_v47  ;;  %v1134_v61 = vadd.s32 4294967295, %v450_v53 }
  0xc5   : > { %v1351_v60 = vpop.f32.mrf.mxu1 }
  0xc6   : > { %v1621_v63 = vsel %vm1614_vm3, %v1618_v33, %v1620_v59  ;;  %v1439_v38 = vadd.f32 %v1351_v60, %v1260_v28  ;;  %v1042_v60 = vsel %vm1031_vm1, %v1039_v14, %v1041_v54  ;;  %vm1780_vm9 = vcmp.lt.s32.totalorder %v1716_v57, 16 }
  0xc7   : > { %v1873_v48 = vadd.f32 %v1621_v63, %v1437_v62  ;;  %v1043_v62 = vrot.slane %v3220_v43, 7  ;;  %vm1166_vm10 = vcmp.ge.s32.totalorder %v1134_v61, 0  ;;  %v1045_v28 = vrot.slane %v3235_v2, 7 }
  0xc8   : > { %2812 = vmatmul.msk.f32.gmra.mxu1 %vm789_vm0, %v3183_v58  ;;  %2845 = vmatmul.msk.f32.gmra.mxu2 %vm789_vm0, %v3183_v58 }
  0xc9   : > { %v1909_v7 = vadd.f32 %v3209_v17, %v1873_v48  ;;  %v1044_v43 = vsel %vm1031_vm1, %v1041_v54, %v1043_v62  ;;  %v1046_v47 = vsel %vm1031_vm1, %v1043_v62, %v1045_v28 }
  0xcb   : > { %1942 = vst.msk [vmem:[#allocation2 + $0x10] sm:$0xff] %vm1939_vm4, %v1909_v7  ;;  %v1498_v46 = vpop.f32.mrf.mxu2  ;;  %v1972_v16 = vld [vmem:[#allocation2] ss:$2 sm:$0xff]  ;;  %v2004_v18 = vld [vmem:[#allocation2 + $0x1] ss:$2 sm:$0xff] }
  0xcc   : > { %v1622_v19 = vrot.slane %v1498_v46, 1  ;;  %v2035_v21 = vmax.f32 %v1972_v16, %v2004_v18  ;;  %v3257_v31 = vpop.f32.mrf.mxu0  ;;  %v379_v16 = vadd.s32 56, %v3162_v49  ;;  %v1262_v18 = vsel %vm1166_vm10, %v1044_v43, 0.0 }
  0xcd   : > { %v1354_v20 = vpop.f32.mrf.mxu1 }
  0xce   : > { %v1623_v58 = vsel %vm1614_vm3, %v1620_v59, %v1622_v19  ;;  %v3244_v23 = vmax.f32 %v2035_v21, 0.0  ;;  %v457_v25 = vand.u32 15, %v379_v16 }
  0xcf   : > { %v1842_v56 = vsel %vm1778_vm7, %v1623_v58, 0.0 }
  0xd0   : > { %2813 = vmatmul.msk.f32.gmra.mxu1 %vm789_vm0, %v3016_v4  ;;  %v1874_v24 = vadd.f32 %v1842_v56, %v1438_v22  ;;  %2846 = vmatmul.msk.f32.gmra.mxu2 %vm789_vm0, %v3016_v4  ;;  %v1718_v35 = vadd.s32 1, %v457_v25 }
  0xd1   : > { %2859 = vmatmul.msk.f32.vlgmr.msrb.gmra.mxu3 %vm1939_vm4, %v3244_v23  ;;  %2893 = vmatmul.msk.f32.vlgmr.msrb.gmra.mxu0 %vm1939_vm4, %v3244_v23 }
  0xd2   : > { %v1910_v33 = vadd.f32 %v3209_v17, %v1874_v24  ;;  %vm1782_vm11 = vcmp.lt.s32.totalorder %v1718_v35, 16 }
  0xd3   : > { %v1501_v37 = vpop.f32.mrf.mxu2 }
  0xd4   : > { %1943 = vst.msk [vmem:[#allocation2 + $0x18] sm:$0xff] %vm1939_vm4, %v1910_v33  ;;  %v1624_v40 = vrot.slane %v1501_v37, 1  ;;  %v3271_v1 = vpop.f32.mrf.mxu0 }
  0xd5   : > { %v1357_v4 = vpop.f32.mrf.mxu1 }
  0xd6   : > { %v1625_v51 = vsel %vm1614_vm3, %v1622_v19, %v1624_v40 }
  0xd7   : > { %v1875_v55 = vadd.f32 %v1625_v51, %v1439_v38 }
  0xd8   : > { %2814 = vmatmul.msk.f32.gmra.mxu1 %vm789_vm0, %v3033_v8  ;;  %2847 = vmatmul.msk.f32.gmra.mxu2 %vm789_vm0, %v3033_v8  ;;  %v1440_v8 = vadd.f32 %v1354_v20, %v1042_v60  ;;  %v380_v20 = vadd.s32 64, %v3162_v49 }
  0xd9   : > { %v1911_v59 = vadd.f32 %v3209_v17, %v1875_v55 }
  0xda   : > { %v464_v26 = vand.u32 15, %v380_v20 }
  0xdb   : > { %1944 = vst.msk [vmem:[#allocation2 + $0x20] sm:$0xff] %vm1939_vm4, %v1911_v59  ;;  %v1504_v63 = vpop.f32.mrf.mxu2  ;;  %v1974_v0 = vld [vmem:[#allocation2 + $0x10] ss:$2 sm:$0xff]  ;;  %v2006_v13 = vld [vmem:[#allocation2 + $0x11] ss:$2 sm:$0xff] }
  0xdc   : > { %v1626_v48 = vrot.slane %v1504_v63, 1  ;;  %v2036_v7 = vmax.f32 %v1974_v0, %v2006_v13  ;;  %v3289_v56 = vpop.f32.mrf.mxu0  ;;  %v381_v63 = vadd.s32 72, %v3162_v49 }
  0xdd   : > { %v1360_v3 = vpop.f32.mrf.mxu1 }
  0xde   : > { %v1627_v10 = vsel %vm1614_vm3, %v1624_v40, %v1626_v48  ;;  %v3274_v15 = vmax.f32 %v2036_v7, 0.0  ;;  %v1136_v40 = vadd.s32 4294967295, %v464_v26  ;;  %v1442_v57 = vadd.f32 %v1360_v3, %v1046_v47 }
  0xdf   : > { %v1844_v14 = vsel %vm1780_vm9, %v1627_v10, 0.0  ;;  %v471_v10 = vand.u32 15, %v381_v63 }
  0xe0   : > { %2815 = vmatmul.msk.f32.gmra.mxu1 %vm789_vm0, %v3045_v11  ;;  %v1876_v46 = vadd.f32 %v1844_v14, %v1440_v8  ;;  %2848 = vmatmul.msk.f32.gmra.mxu2 %vm789_vm0, %v3045_v11  ;;  %v1441_v11 = vadd.f32 %v1357_v4, %v1262_v18  ;;  %v1047_v4 = vrot.slane %v3257_v31, 7  ;;  %vm1168_vm12 = vcmp.ge.s32.totalorder %v1136_v40, 0 }
  0xe1   : > { %2860 = vmatmul.msk.f32.gmra.mxu3 %vm1939_vm4, %v3274_v15  ;;  %2894 = vmatmul.msk.f32.gmra.mxu0 %vm1939_vm4, %v3274_v15  ;;  %v1720_v18 = vadd.s32 1, %v471_v10 }
  0xe2   : > { %v1912_v19 = vadd.f32 %v3209_v17, %v1876_v46  ;;  %v1048_v61 = vsel %vm1031_vm1, %v1045_v28, %v1047_v4  ;;  %v1049_v46 = vrot.slane %v3271_v1, 7 }
  0xe3   : > { %v1507_v21 = vpop.f32.mrf.mxu2  ;;  %v1264_v0 = vsel %vm1168_vm12, %v1048_v61, 0.0  ;;  %vm1784_vm13 = vcmp.lt.s32.totalorder %v1720_v18, 16 }
  0xe4   : > { %1945 = vst.msk [vmem:[#allocation2 + $0x28] sm:$0xff] %vm1939_vm4, %v1912_v19  ;;  %v1628_v22 = vrot.slane %v1507_v21, 1  ;;  %v3307_v62 = vpop.f32.mrf.mxu0 }
  0xe5   : > { %v1363_v58 = vpop.f32.mrf.mxu1 }
  0xe6   : > { %v1629_v24 = vsel %vm1614_vm3, %v1626_v48, %v1628_v22  ;;  %v382_v48 = vadd.s32 80, %v3162_v49 }
  0xe7   : > { %v1877_v33 = vadd.f32 %v1629_v24, %v1441_v11 }
  0xe8   : > { %2816 = vmatmul.msk.f32.gmra.mxu1 %vm789_vm0, %v3019_v5  ;;  %2849 = vmatmul.msk.f32.gmra.mxu2 %vm789_vm0, %v3019_v5  ;;  %v478_v14 = vand.u32 15, %v382_v48 }
  0xe9   : > { %v1913_v37 = vadd.f32 %v3209_v17, %v1877_v33 }
  0xea   : > { %v1138_v21 = vadd.s32 4294967295, %v478_v14 }
  0xeb   : > { %1946 = vst.msk [vmem:[#allocation2 + $0x30] sm:$0xff] %vm1939_vm4, %v1913_v37  ;;  %v1510_v38 = vpop.f32.mrf.mxu2  ;;  %v1976_v51 = vld [vmem:[#allocation2 + $0x20] ss:$2 sm:$0xff]  ;;  %v2008_v2 = vld [vmem:[#allocation2 + $0x21] ss:$2 sm:$0xff] }
  0xec   : > { %v1630_v53 = vrot.slane %v1510_v38, 1  ;;  %v2037_v55 = vmax.f32 %v1976_v51, %v2008_v2  ;;  %v3326_v20 = vpop.f32.mrf.mxu0  ;;  %vm1170_vm14 = vcmp.ge.s32.totalorder %v1138_v21, 0  ;;  %v384_v51 = vadd.s32 96, %v3162_v49 }
  0xed   : > { %v1366_v54 = vpop.f32.mrf.mxu1  ;;  %v1055_v48 = vrot.slane %v3326_v20, 7  ;;  %v385_v21 = vadd.s32 104, %v3162_v49 }
  0xee   : > { %v1631_v5 = vsel %vm1614_vm3, %v1628_v22, %v1630_v53  ;;  %v3302_v59 = vmax.f32 %v2037_v55, 0.0  ;;  %v1051_v22 = vrot.slane %v3289_v56, 7  ;;  %v492_v61 = vand.u32 15, %v384_v51 }
  0xef   : > { %v1846_v31 = vsel %vm1782_vm11, %v1631_v5, 0.0 }
  0xf0   : > { %2817 = vmatmul.msk.f32.gmra.mxu1 %vm789_vm0, %v3036_v9  ;;  %v1878_v60 = vadd.f32 %v1846_v31, %v1442_v57  ;;  %2850 = vmatmul.msk.f32.gmra.mxu2 %vm789_vm0, %v3036_v9  ;;  %v1443_v9 = vadd.f32 %v1363_v58, %v1264_v0  ;;  %v1050_v58 = vsel %vm1031_vm1, %v1047_v4, %v1049_v46  ;;  %v383_v4 = vadd.s32 88, %v3162_v49 }
  0xf1   : > { %2861 = vmatmul.msk.f32.gmra.mxu3 %vm1939_vm4, %v3302_v59  ;;  %2895 = vmatmul.msk.f32.gmra.mxu0 %vm1939_vm4, %v3302_v59  ;;  %v1052_v37 = vsel %vm1031_vm1, %v1049_v46, %v1051_v22  ;;  %v1053_v31 = vrot.slane %v3307_v62, 7 }
  0xf2   : > { %v1914_v13 = vadd.f32 %v3209_v17, %v1878_v60  ;;  %v1266_v47 = vsel %vm1170_vm14, %v1052_v37, 0.0  ;;  %v485_v55 = vand.u32 15, %v383_v4 }
  0xf3   : > { %v1513_v3 = vpop.f32.mrf.mxu2  ;;  %v1056_v18 = vsel %vm1031_vm1, %v1053_v31, %v1055_v48 }
  0xf4   : > { %1947 = vst.msk [vmem:[#allocation2 + $0x38] sm:$0xff] %vm1939_vm4, %v1914_v13  ;;  %v1632_v7 = vrot.slane %v1513_v3, 1  ;;  %v1722_v63 = vadd.s32 1, %v485_v55  ;;  %v1140_v13 = vadd.s32 4294967295, %v492_v61  ;;  %v1054_v3 = vsel %vm1031_vm1, %v1051_v22, %v1053_v31 }
  0xf5   : > { %v1369_v8 = vpop.f32.mrf.mxu1 }
  0xf6   : > { %v1633_v43 = vsel %vm1614_vm3, %v1630_v53, %v1632_v7  ;;  %v3346_v53 = vpop.f32.mrf.mxu0  ;;  %v1445_v57 = vadd.f32 %v1369_v8, %v1266_v47  ;;  %vm1786_vm15 = vcmp.lt.s32.totalorder %v1722_v63, 16  ;;  %vm1172_vm2 = vcmp.ge.s32.totalorder %v1140_v13, 0 }
  0xf7   : > { %v1879_v16 = vadd.f32 %v1633_v43, %v1443_v9  ;;  %v1268_v22 = vsel %vm1172_vm2, %v1056_v18, 0.0 }
  0xf8   : > { %2818 = vmatmul.msk.f32.gmra.mxu1 %vm789_vm0, %v3048_v12  ;;  %2851 = vmatmul.msk.f32.gmra.mxu2 %vm789_vm0, %v3048_v12  ;;  %v1444_v12 = vadd.f32 %v1366_v54, %v1050_v58 }
  0xf9   : > { %v1915_v19 = vadd.f32 %v3209_v17, %v1879_v16 }
  0xfb   : > { %1948 = vst.msk [vmem:[#allocation2 + $0x40] sm:$0xff] %vm1939_vm4, %v1915_v19  ;;  %v1516_v1 = vpop.f32.mrf.mxu2  ;;  %v1978_v25 = vld [vmem:[#allocation2 + $0x30] ss:$2 sm:$0xff]  ;;  %v2010_v11 = vld [vmem:[#allocation2 + $0x31] ss:$2 sm:$0xff] }
  0xfc   : > { %v1634_v24 = vrot.slane %v1516_v1, 1  ;;  %v2038_v28 = vmax.f32 %v1978_v25, %v2010_v11  ;;  %v386_v1 = vadd.s32 112, %v3162_v49 }
  0xfd   : > { %v1372_v26 = vpop.f32.mrf.mxu1 }
  0xfe   : > { %v1635_v33 = vsel %vm1614_vm3, %v1632_v7, %v1634_v24  ;;  %v3332_v35 = vmax.f32 %v2038_v28, 0.0  ;;  %v3359_v14 = vpop.f32.mrf.mxu0 }
  0xff   : > { %v1848_v56 = vsel %vm1784_vm13, %v1635_v33, 0.0  ;;  %v1057_v33 = vrot.slane %v3346_v53, 7 }
 0x100   : > { %2819 = vmatmul.msk.f32.gmra.mxu1 %vm789_vm0, %v3027_v6  ;;  %v1880_v40 = vadd.f32 %v1848_v56, %v1444_v12  ;;  %2852 = vmatmul.msk.f32.gmra.mxu2 %vm789_vm0, %v3027_v6  ;;  %v506_v12 = vand.u32 15, %v386_v1 }
 0x101   : > { %2862 = vmatmul.msk.f32.gmra.mxu3 %vm1939_vm4, %v3332_v35  ;;  %2896 = vmatmul.msk.f32.gmra.mxu0 %vm1939_vm4, %v3332_v35  ;;  %v1058_v51 = vsel %vm1031_vm1, %v1055_v48, %v1057_v33 }
 0x102   : > { %v1916_v38 = vadd.f32 %v3209_v17, %v1880_v40  ;;  %v1142_v47 = vadd.s32 4294967295, %v506_v12 }
 0x103   : > { %v1519_v2 = vpop.f32.mrf.mxu2 }
 0x104   : > { %1949 = vst.msk [vmem:[#allocation2 + $0x48] sm:$0xff] %vm1939_vm4, %v1916_v38  ;;  %v1636_v54 = vrot.slane %v1519_v2, 1  ;;  %v1059_v38 = vrot.slane %v3359_v14, 7  ;;  %vm1174_vm6 = vcmp.ge.s32.totalorder %v1142_v47, 0  ;;  %v389_v47 = vadd.s32 136, %v3162_v49 }
 0x105   : > { %v1375_v6 = vpop.f32.mrf.mxu1 }
 0x106   : > { %v1637_v5 = vsel %vm1614_vm3, %v1634_v24, %v1636_v54  ;;  %v948_v56 = vpop.f32.mrf.mxu0  ;;  %v1060_v31 = vsel %vm1031_vm1, %v1057_v33, %v1059_v38 }
 0x107   : > { %v1881_v60 = vadd.f32 %v1637_v5, %v1445_v57  ;;  %v1270_v48 = vsel %vm1174_vm6, %v1060_v31, 0.0 }
 0x108   : > { %2820 = vmatmul.msk.f32.gmra.mxu1 %vm789_vm0, %v3115_v29  ;;  %2853 = vmatmul.msk.f32.gmra.mxu2 %vm789_vm0, %v3115_v29  ;;  %v1446_v29 = vadd.f32 %v1372_v26, %v1054_v3  ;;  %v499_v26 = vand.u32 15, %v385_v21 }
 0x109   : > { %v1917_v0 = vadd.f32 %v3209_v17, %v1881_v60 }
 0x10a   : > { %v1724_v40 = vadd.s32 1, %v499_v26 }
 0x10b   : > { %1950 = vst.msk [vmem:[#allocation2 + $0x50] sm:$0xff] %vm1939_vm4, %v1917_v0  ;;  %v1522_v7 = vpop.f32.mrf.mxu2  ;;  %v1980_v8 = vld [vmem:[#allocation2 + $0x40] ss:$2 sm:$0xff]  ;;  %v2012_v62 = vld [vmem:[#allocation2 + $0x41] ss:$2 sm:$0xff]  ;;  %v387_v0 = vadd.s32 120, %v3162_v49 }
 0x10c   : > { %v1638_v10 = vrot.slane %v1522_v7, 1  ;;  %v2039_v43 = vmax.f32 %v1980_v8, %v2012_v62  ;;  %vm1788_vm5 = vcmp.lt.s32.totalorder %v1724_v40, 16  ;;  %v388_v7 = vadd.s32 128, %v3162_v49 }
 0x10d   : > { %v1378_v9 = vpop.f32.mrf.mxu1 }
 0x10e   : > { %v1639_v46 = vsel %vm1614_vm3, %v1636_v54, %v1638_v10  ;;  %v3362_v16 = vmax.f32 %v2039_v43, 0.0  ;;  %v1448_v5 = vadd.f32 %v1378_v9, %v1058_v51  ;;  %v951_v13 = vpop.f32.mrf.mxu0  ;;  %v2068_v9 = vld [vmem:[%s3782_s3 + $0x8] sm:$0xff] }
 0x10f   : > { %v1850_v19 = vsel %vm1786_vm15, %v1639_v46, 0.0  ;;  %2263 = vmatpush.msra.mxu3 %v2068_v9  ;;  %v1061_v46 = vrot.slane %v948_v56, 7 }
 0x110   : > { %2821 = vmatmul.msk.f32.gmra.mxu1 %vm789_vm0, %v3130_v34  ;;  %v1882_v20 = vadd.f32 %v1850_v19, %v1446_v29  ;;  %2854 = vmatmul.msk.f32.gmra.mxu2 %vm789_vm0, %v3130_v34  ;;  %v1447_v34 = vadd.f32 %v1375_v6, %v1268_v22  ;;  %v520_v29 = vand.u32 15, %v388_v7  ;;  %v1063_v22 = vrot.slane %v951_v13, 7 }
 0x111   : > { %2863 = vmatmul.msk.f32.gmra.mxu3 %vm1939_vm4, %v3362_v16  ;;  %2897 = vmatmul.msk.f32.gmra.mxu0 %vm1939_vm4, %v3362_v16 }
 0x112   : > { %v1918_v58 = vadd.f32 %v3209_v17, %v1882_v20  ;;  %v1144_v21 = vadd.s32 4294967295, %v520_v29  ;;  %v1064_v56 = vsel %vm1031_vm1, %v1061_v46, %v1063_v22 }
 0x113   : > { %v1525_v25 = vpop.f32.mrf.mxu2 }
 0x114   : > { %1951 = vst.msk [vmem:[#allocation2 + $0x58] sm:$0xff] %vm1939_vm4, %v1918_v58  ;;  %v1640_v11 = vrot.slane %v1525_v25, 1  ;;  %v1062_v58 = vsel %vm1031_vm1, %v1059_v38, %v1061_v46  ;;  %vm1176_vm7 = vcmp.ge.s32.totalorder %v1144_v21, 0 }
 0x115   : > { %v1381_v24 = vpop.f32.mrf.mxu1  ;;  %v1272_v38 = vsel %vm1176_vm7, %v1064_v56, 0.0 }
 0x116   : > { %v1641_v28 = vsel %vm1614_vm3, %v1638_v10, %v1640_v11  ;;  %v1449_v43 = vadd.f32 %v1381_v24, %v1270_v48  ;;  %v954_v26 = vpop.f32.mrf.mxu0 }
 0x117   : > { %v1883_v37 = vadd.f32 %v1641_v28, %v1447_v34 }
 0x118   : > { %2822 = vmatmul.msk.f32.gmra.mxu1 %vm789_vm0, %v3149_v42  ;;  %2855 = vmatmul.msk.f32.gmra.mxu2 %vm789_vm0, %v3149_v42 }
 0x119   : > { %v1919_v4 = vadd.f32 %v3209_v17, %v1883_v37 }
 0x11b   : > { %1952 = vst.msk [vmem:[#allocation2 + $0x60] sm:$0xff] %vm1939_vm4, %v1919_v4  ;;  %v1528_v2 = vpop.f32.mrf.mxu2  ;;  %v1982_v53 = vld [vmem:[#allocation2 + $0x50] ss:$2 sm:$0xff]  ;;  %v2014_v54 = vld [vmem:[#allocation2 + $0x51] ss:$2 sm:$0xff] }
 0x11c   : > { %v1642_v6 = vrot.slane %v1528_v2, 1  ;;  %v2040_v57 = vmax.f32 %v1982_v53, %v2014_v54  ;;  %v390_v2 = vadd.s32 144, %v3162_v49 }
 0x11d   : > { %v1384_v55 = vpop.f32.mrf.mxu1 }
 0x11e   : > { %v1643_v42 = vsel %vm1614_vm3, %v1640_v11, %v1642_v6  ;;  %v3388_v61 = vmax.f32 %v2040_v57, 0.0  ;;  %v1450_v12 = vadd.f32 %v1384_v55, %v1062_v58  ;;  %v527_v55 = vand.u32 15, %v389_v47 }
 0x11f   : > { %v1852_v60 = vsel %vm1788_vm5, %v1643_v42, 0.0  ;;  %v534_v31 = vand.u32 15, %v390_v2 }
 0x120   : > { %2823 = vmatmul.msk.f32.gmra.mxu1 %vm789_vm0, %v3174_v52  ;;  %v1884_v63 = vadd.f32 %v1852_v60, %v1448_v5  ;;  %2856 = vmatmul.msk.f32.gmra.mxu2 %vm789_vm0, %v3174_v52  ;;  %v513_v52 = vand.u32 15, %v387_v0  ;;  %v957_v5 = vpop.f32.mrf.mxu0  ;;  %v1065_v60 = vrot.slane %v954_v26, 7  ;;  %v1728_v0 = vadd.s32 1, %v527_v55 }
 0x121   : > { %2864 = vmatmul.msk.f32.gmra.mxu3 %vm1939_vm4, %v3388_v61  ;;  %2898 = vmatmul.msk.f32.gmra.mxu0 %vm1939_vm4, %v3388_v61  ;;  %v1146_v48 = vadd.s32 4294967295, %v534_v31 }
 0x122   : > { %v1920_v3 = vadd.f32 %v3209_v17, %v1884_v63  ;;  %v1726_v19 = vadd.s32 1, %v513_v52  ;;  %v1066_v7 = vsel %vm1031_vm1, %v1063_v22, %v1065_v60  ;;  %vm1792_vm8 = vcmp.lt.s32.totalorder %v1728_v0, 16 }
 0x123   : > { %v1531_v8 = vpop.f32.mrf.mxu2  ;;  %vm1178_vm9 = vcmp.ge.s32.totalorder %v1146_v48, 0  ;;  %v391_v22 = vadd.s32 152, %v3162_v49 }
 0x124   : > { %1953 = vst.msk [vmem:[#allocation2 + $0x68] sm:$0xff] %vm1939_vm4, %v1920_v3  ;;  %v1644_v62 = vrot.slane %v1531_v8, 1  ;;  %vm1790_vm0 = vcmp.lt.s32.totalorder %v1726_v19, 16  ;;  %v1067_v3 = vrot.slane %v957_v5, 7 }
 0x125   : > { %v1387_v10 = vpop.f32.mrf.mxu1 }
 0x126   : > { %v1645_v14 = vsel %vm1614_vm3, %v1642_v6, %v1644_v62  ;;  %v1451_v57 = vadd.f32 %v1387_v10, %v1272_v38 }
 0x127   : > { %v1885_v18 = vadd.f32 %v1645_v14, %v1449_v43 }
 0x129   : > { %v1921_v20 = vadd.f32 %v3209_v17, %v1885_v18  ;;  %v1068_v18 = vsel %vm1031_vm1, %v1065_v60, %v1067_v3 }
 0x12a   : > { %v1274_v58 = vsel %vm1178_vm9, %v1068_v18, 0.0 }
 0x12b   : > { %1954 = vst.msk [vmem:[#allocation2 + $0x70] sm:$0xff] %vm1939_vm4, %v1921_v20  ;;  %v1534_v1 = vpop.f32.mrf.mxu2  ;;  %v1984_v25 = vld [vmem:[#allocation2 + $0x60] ss:$2 sm:$0xff]  ;;  %v2016_v11 = vld [vmem:[#allocation2 + $0x61] ss:$2 sm:$0xff]  ;;  %v960_v20 = vpop.f32.mrf.mxu0 }
 0x12c   : > { %v1646_v24 = vrot.slane %v1534_v1, 1  ;;  %v2041_v28 = vmax.f32 %v1984_v25, %v2016_v11  ;;  %v392_v11 = vadd.s32 160, %v3162_v49 }
 0x12d   : > { %v1390_v34 = vpop.f32.mrf.mxu1 }
 0x12e   : > { %v1647_v33 = vsel %vm1614_vm3, %v1644_v62, %v1646_v24  ;;  %v3411_v37 = vmax.f32 %v2041_v28, 0.0  ;;  %v1452_v14 = vadd.f32 %v1390_v34, %v1066_v7  ;;  %v541_v34 = vand.u32 15, %v391_v22 }
 0x12f   : > { %v1854_v40 = vsel %vm1790_vm0, %v1647_v33, 0.0  ;;  %v1069_v33 = vrot.slane %v960_v20, 7  ;;  %v1073_v22 = vrot.slane %v3109_v27, 7 }
 0x130   : > { %v1886_v4 = vadd.f32 %v1854_v40, %v1450_v12  ;;  %2865 = vmatmul.msk.f32.gmra.mxu3 %vm1939_vm4, %v3411_v37  ;;  %2899 = vmatmul.msk.f32.gmra.mxu0 %vm1939_vm4, %v3411_v37  ;;  %v548_v40 = vand.u32 15, %v392_v11 }
 0x132   : > { %v1922_v51 = vadd.f32 %v3209_v17, %v1886_v4  ;;  %v1730_v4 = vadd.s32 1, %v541_v34  ;;  %v1148_v2 = vadd.s32 4294967295, %v548_v40  ;;  %v1075_v34 = vrot.slane %v3124_v32, 7 }
 0x133   : > { %v1537_v53 = vpop.f32.mrf.mxu2  ;;  %v963_v38 = vpop.f32.mrf.mxu0 }
 0x134   : > { %1955 = vst.msk [vmem:[#allocation2 + $0x78] sm:$0xff] %vm1939_vm4, %v1922_v51  ;;  %v1648_v54 = vrot.slane %v1537_v53, 1  ;;  %v1070_v51 = vsel %vm1031_vm1, %v1067_v3, %v1069_v33  ;;  %vm1794_vm10 = vcmp.lt.s32.totalorder %v1730_v4, 16  ;;  %vm1180_vm11 = vcmp.ge.s32.totalorder %v1148_v2, 0 }
 0x135   : > { %v1393_v6 = vpop.f32.mrf.mxu1  ;;  %v393_v3 = vadd.s32 168, %v3162_v49  ;;  %v1076_v32 = vsel %vm1031_vm1, %v1073_v22, %v1075_v34 }
 0x136   : > { %v1649_v42 = vsel %vm1614_vm3, %v1646_v24, %v1648_v54  ;;  %v1453_v28 = vadd.f32 %v1393_v6, %v1274_v58 }
 0x137   : > { %v1887_v63 = vadd.f32 %v1649_v42, %v1451_v57  ;;  %v1071_v42 = vrot.slane %v963_v38, 7 }
 0x139   : > { %v1923_v13 = vadd.f32 %v3209_v17, %v1887_v63  ;;  %v1072_v0 = vsel %vm1031_vm1, %v1069_v33, %v1071_v42 }
 0x13a   : > { %v1276_v7 = vsel %vm1180_vm11, %v1072_v0, 0.0  ;;  %v1077_v0 = vrot.slane %v3138_v39, 7  ;;  %vm2483_vm11 = vcmask 259072  }
 0x13b   : > { %1956 = vst.msk [vmem:[#allocation2 + $0x80] sm:$0xff] %vm1939_vm4, %v1923_v13  ;;  %v1540_v8 = vpop.f32.mrf.mxu2  ;;  %v1986_v62 = vld [vmem:[#allocation2 + $0x70] ss:$2 sm:$0xff]  ;;  %v2018_v52 = vld [vmem:[#allocation2 + $0x71] ss:$2 sm:$0xff] }
 0x13c   : > { %v1650_v9 = vrot.slane %v1540_v8, 1  ;;  %v2042_v43 = vmax.f32 %v1986_v62, %v2018_v52 }
 0x13d   : > { %v1396_v10 = vpop.f32.mrf.mxu1 }
 0x13e   : > { %v1651_v29 = vsel %vm1614_vm3, %v1648_v54, %v1650_v9  ;;  %v3427_v46 = vmax.f32 %v2042_v43, 0.0  ;;  %v1454_v31 = vadd.f32 %v1396_v10, %v1070_v51  ;;  %v555_v10 = vand.u32 15, %v393_v3  ;;  %v3478_v3 = vpop.f32.mrf.mxu3 }
 0x13f   : > { %v1856_v19 = vsel %vm1792_vm8, %v1651_v29, 0.0 }
 0x140   : > { %v1888_v21 = vadd.f32 %v1856_v19, %v1452_v14  ;;  %2866 = vmatmul.msk.f32.gmra.mxu3 %vm1939_vm4, %v3427_v46  ;;  %2900 = vmatmul.msk.f32.gmra.mxu0 %vm1939_vm4, %v3427_v46  ;;  %v394_v14 = vadd.s32 176, %v3162_v49  ;;  %v1732_v19 = vadd.s32 1, %v555_v10 }
 0x142   : > { %v1924_v1 = vadd.f32 %v3209_v17, %v1888_v21  ;;  %v562_v21 = vand.u32 15, %v394_v14  ;;  %vm1796_vm12 = vcmp.lt.s32.totalorder %v1732_v19, 16 }
 0x143   : > { %v1543_v25 = vpop.f32.mrf.mxu2 }
 0x144   : > { %1957 = vst.msk [vmem:[#allocation2 + $0x88] sm:$0xff] %vm1939_vm4, %v1924_v1  ;;  %v1652_v26 = vrot.slane %v1543_v25, 1 }
 0x145   : > { %v1399_v24 = vpop.f32.mrf.mxu1 }
 0x146   : > { %v1653_v12 = vsel %vm1614_vm3, %v1650_v9, %v1652_v26  ;;  %v1455_v43 = vadd.f32 %v1399_v24, %v1276_v7 }
 0x147   : > { %v1889_v56 = vadd.f32 %v1653_v12, %v1453_v28  ;;  %v1074_v28 = vsel %vm1031_vm1, %v1071_v42, %v1073_v22  ;;  %v1150_v12 = vadd.s32 4294967295, %v562_v21  ;;  %v397_v21 = vadd.s32 200, %v3162_v49 }
 0x148   : > { %v1080_v22 = vsel %vm1031_vm1, %v1077_v0, %v1079_v36 }
 0x149   : > { %v1925_v47 = vadd.f32 %v3209_v17, %v1889_v56  ;;  %vm1182_vm13 = vcmp.ge.s32.totalorder %v1150_v12, 0  ;;  %v398_v12 = vadd.s32 208, %v3162_v49 }
 0x14a   : > { %v1278_v2 = vsel %vm1182_vm13, %v1076_v32, 0.0  ;;  %vm2599_vm13 = vcmask 1042432  }
 0x14b   : > { %1958 = vst.msk [vmem:[#allocation2 + $0x90] sm:$0xff] %vm1939_vm4, %v1925_v47  ;;  %v1546_v53 = vpop.f32.mrf.mxu2  ;;  %v1988_v54 = vld [vmem:[#allocation2 + $0x80] ss:$2 sm:$0xff]  ;;  %v2020_v55 = vld [vmem:[#allocation2 + $0x81] ss:$2 sm:$0xff]  ;;  %v395_v47 = vadd.s32 184, %v3162_v49 }
 0x14c   : > { %v1654_v57 = vrot.slane %v1546_v53, 1  ;;  %v2043_v5 = vmax.f32 %v1988_v54, %v2020_v55 }
 0x14d   : > { %v1402_v6 = vpop.f32.mrf.mxu1  ;;  %v569_v55 = vand.u32 15, %v395_v47 }
 0x14e   : > { %v1655_v60 = vsel %vm1614_vm3, %v1652_v26, %v1654_v57  ;;  %v3443_v63 = vmax.f32 %v2043_v5, 0.0  ;;  %v1456_v33 = vadd.f32 %v1402_v6, %v1074_v28  ;;  %v396_v5 = vadd.s32 192, %v3162_v49 }
 0x14f   : > { %v1858_v13 = vsel %vm1794_vm10, %v1655_v60, 0.0  ;;  %v1734_v60 = vadd.s32 1, %v569_v55  ;;  %vm2398_vm10 = vcmask 1045504  }
 0x150   : > { %v1890_v48 = vadd.f32 %v1858_v13, %v1454_v31  ;;  %2867 = vmatmul.msk.f32.gmra.mxu3 %vm1939_vm4, %v3443_v63  ;;  %2901 = vmatmul.msk.f32.gmra.mxu0 %vm1939_vm4, %v3443_v63 }
 0x151   : > { %vm1798_vm14 = vcmp.lt.s32.totalorder %v1734_v60, 16 }
 0x152   : > { %v1926_v8 = vadd.f32 %v3209_v17, %v1890_v48  ;;  %v576_v48 = vand.u32 15, %v396_v5 }
 0x153   : > { %v1549_v62 = vpop.f32.mrf.mxu2 }
 0x154   : > { %1959 = vst.msk [vmem:[#allocation2 + $0x98] sm:$0xff] %vm1939_vm4, %v1926_v8  ;;  %v1656_v52 = vrot.slane %v1549_v62, 1  ;;  %v1152_v14 = vadd.s32 4294967295, %v576_v48 }
 0x155   : > { %v1405_v9 = vpop.f32.mrf.mxu1 }
 0x156   : > { %v1657_v29 = vsel %vm1614_vm3, %v1654_v57, %v1656_v52  ;;  %v2067_v57 = vld [vmem:[%s3782_s3] sm:$0xff]  ;;  %v1457_v6 = vadd.f32 %v1405_v9, %v1278_v2  ;;  %vm1184_vm15 = vcmp.ge.s32.totalorder %v1152_v14, 0 }
 0x157   : > { %v1891_v18 = vadd.f32 %v1657_v29, %v1455_v43  ;;  %2264 = vmatpush.msra.mxu3 %v2067_v57  ;;  %v1078_v43 = vsel %vm1031_vm1, %v1075_v34, %v1077_v0  ;;  %v583_v34 = vand.u32 15, %v397_v21 }
 0x159   : > { %v1927_v20 = vadd.f32 %v3209_v17, %v1891_v18 }
 0x15b   : > { %1960 = vst.msk [vmem:[#allocation2 + $0xa0] sm:$0xff] %vm1939_vm4, %v1927_v20  ;;  %v1552_v58 = vpop.f32.mrf.mxu2  ;;  %v1990_v1 = vld [vmem:[#allocation2 + $0x90] ss:$2 sm:$0xff]  ;;  %v2022_v25 = vld [vmem:[#allocation2 + $0x91] ss:$2 sm:$0xff] }
 0x15c   : > { %v1658_v11 = vrot.slane %v1552_v58, 1  ;;  %v2044_v24 = vmax.f32 %v1990_v1, %v2022_v25  ;;  %v3493_v58 = vpop.f32.mrf.mxu3 }
 0x15d   : > { %v1408_v26 = vpop.f32.mrf.mxu1 }
 0x15e   : > { %v1659_v56 = vsel %vm1614_vm3, %v1656_v52, %v1658_v11  ;;  %v3461_v40 = vmax.f32 %v2044_v24, 0.0  ;;  %v1458_v29 = vadd.f32 %v1408_v26, %v1078_v43 }
 0x15f   : > { %v1860_v27 = vsel %vm1796_vm12, %v1659_v56, 0.0  ;;  %v1736_v56 = vadd.s32 1, %v583_v34  ;;  %vm2597_vm12 = vcmask 1041408  }
 0x160   : > { %v1892_v4 = vadd.f32 %v1860_v27, %v1456_v33  ;;  %2868 = vmatmul.msk.f32.gmra.mxu3 %vm1939_vm4, %v3461_v40  ;;  %2902 = vmatmul.msk.f32.gmra.mxu0 %vm1939_vm4, %v3461_v40  ;;  %v590_v27 = vand.u32 15, %v398_v12 }
 0x161   : > { %vm1800_vm2 = vcmp.lt.s32.totalorder %v1736_v56, 16 }
 0x162   : > { %v1928_v38 = vadd.f32 %v3209_v17, %v1892_v4 }
 0x163   : > { %v1555_v51 = vpop.f32.mrf.mxu2 }
 0x164   : > { %1961 = vst.msk [vmem:[#allocation2 + $0xa8] sm:$0xff] %vm1939_vm4, %v1928_v38  ;;  %v1660_v53 = vrot.slane %v1555_v51, 1  ;;  %v3501_v38 = vpop.f32.mrf.mxu3 }
 0x165   : > { %v1411_v54 = vpop.f32.mrf.mxu1 }
 0x166   : > { %v1661_v42 = vsel %vm1614_vm3, %v1658_v11, %v1660_v53  ;;  %v1280_v11 = vsel %vm1184_vm15, %v1080_v22, 0.0  ;;  %vm2603_vm15 = vcmask 1044480  }
 0x167   : > { %v1893_v31 = vadd.f32 %v1661_v42, %v1457_v6  ;;  %v1459_v28 = vadd.f32 %v1411_v54, %v1280_v11  ;;  %v1154_v54 = vadd.s32 4294967295, %v590_v27 }
 0x169   : > { %v1929_v13 = vadd.f32 %v3209_v17, %v1893_v31  ;;  %v399_v31 = vadd.s32 216, %v3162_v49  ;;  %vm1186_vm5 = vcmp.ge.s32.totalorder %v1154_v54, 0 }
 0x16b   : > { %1962 = vst.msk [vmem:[#allocation2 + $0xb0] sm:$0xff] %vm1939_vm4, %v1929_v13  ;;  %v1558_v7 = vpop.f32.mrf.mxu2  ;;  %v1992_v8 = vld [vmem:[#allocation2 + $0xa0] ss:$2 sm:$0xff]  ;;  %v2024_v62 = vld [vmem:[#allocation2 + $0xa1] ss:$2 sm:$0xff]  ;;  %v1282_v13 = vsel %vm1186_vm5, %v3167_v50, 0.0 }
 0x16c   : > { %v1662_v52 = vrot.slane %v1558_v7, 1  ;;  %v2045_v10 = vmax.f32 %v1992_v8, %v2024_v62  ;;  %v597_v7 = vand.u32 15, %v399_v31 }
 0x16d   : > { %v1414_v9 = vpop.f32.mrf.mxu1 }
 0x16e   : > { %v1663_v39 = vsel %vm1614_vm3, %v1660_v53, %v1662_v52  ;;  %v3483_v18 = vmax.f32 %v2045_v10, 0.0  ;;  %v1460_v55 = vadd.f32 %v1414_v9, %v3144_v41  ;;  %v400_v41 = vadd.s32 224, %v3162_v49 }
 0x16f   : > { %v1862_v19 = vsel %vm1798_vm14, %v1663_v39, 0.0  ;;  %v1738_v14 = vadd.s32 1, %v597_v7  ;;  %v1087_v39 = vrot.slane %v3493_v58, 7  ;;  %vm2601_vm14 = vcmask 1043456  }
 0x170   : > { %v1894_v20 = vadd.f32 %v1862_v19, %v1458_v29  ;;  %2869 = vmatmul.msk.f32.gmra.mxu3 %vm1939_vm4, %v3483_v18  ;;  %2903 = vmatmul.msk.f32.gmra.mxu0 %vm1939_vm4, %v3483_v18  ;;  %v604_v43 = vand.u32 15, %v400_v41  ;;  %v3523_v29 = vld [vmem:[%s3781_s2] ss:$0 sm:$0xff] }
 0x171   : > { %vm1802_vm6 = vcmp.lt.s32.totalorder %v1738_v14, 16 }
 0x172   : > { %v1930_v1 = vadd.f32 %v3209_v17, %v1894_v20  ;;  %v1156_v19 = vadd.s32 4294967295, %v604_v43 }
 0x173   : > { %v1561_v25 = vpop.f32.mrf.mxu2 }
 0x174   : > { %1963 = vst.msk [vmem:[#allocation2 + $0xb8] sm:$0xff] %vm1939_vm4, %v1930_v1  ;;  %v1664_v26 = vrot.slane %v1561_v25, 1  ;;  %vm1188_vm0 = vcmp.ge.s32.totalorder %v1156_v19, 0 }
 0x175   : > { %v1417_v24 = vpop.f32.mrf.mxu1 }
 0x176   : > { %v1665_v33 = vsel %vm1614_vm3, %v1662_v52, %v1664_v26  ;;  %v1461_v8 = vadd.f32 %v1417_v24, %v1282_v13  ;;  %v3516_v52 = vpop.f32.mrf.mxu3 }
 0x177   : > { %v1895_v30 = vadd.f32 %v1665_v33, %v1459_v28 }
 0x179   : > { %v1931_v36 = vadd.f32 %v3209_v17, %v1895_v30 }
 0x17b   : > { %1964 = vst.msk [vmem:[#allocation2 + $0xc0] sm:$0xff] %vm1939_vm4, %v1931_v36  ;;  %v1564_v4 = vpop.f32.mrf.mxu2  ;;  %v1994_v47 = vld [vmem:[#allocation2 + $0xb0] ss:$2 sm:$0xff]  ;;  %v2026_v32 = vld [vmem:[#allocation2 + $0xb1] ss:$2 sm:$0xff]  ;;  %v402_v36 = vadd.s32 240, %v3162_v49 }
 0x17c   : > { %v1666_v51 = vrot.slane %v1564_v4, 1  ;;  %v2046_v53 = vmax.f32 %v1994_v47, %v2026_v32  ;;  %v611_v4 = vand.u32 15, %v401_v44 }
 0x17d   : > { %v1420_v2 = vpop.f32.mrf.mxu1 }
 0x17e   : > { %v1667_v57 = vsel %vm1614_vm3, %v1664_v26, %v1666_v51  ;;  %v3505_v6 = vmax.f32 %v2046_v53, 0.0  ;;  %v996_v12 = vpop.f32.mrf.mxu3  ;;  %v618_v53 = vand.u32 15, %v402_v36  ;;  %v1740_v54 = vadd.s32 1, %v611_v4 }
 0x17f   : > { %v1864_v5 = vsel %vm1800_vm2, %v1667_v57, 0.0  ;;  %vm2624_vm2 = vcmask 261120  }
 0x180   : > { %v1896_v42 = vadd.f32 %v1864_v5, %v1460_v55  ;;  %2870 = vmatmul.msk.f32.gmra.mxu3 %vm1939_vm4, %v3505_v6  ;;  %2904 = vmatmul.msk.f32.gmra.mxu0 %vm1939_vm4, %v3505_v6  ;;  %v403_v55 = vadd.s32 248, %v3162_v49  ;;  %vm1804_vm7 = vcmp.lt.s32.totalorder %v1740_v54, 16 }
 0x182   : > { %v1932_v60 = vadd.f32 %v3209_v17, %v1896_v42  ;;  %v1085_v17 = vrot.slane %v3478_v3, 7  ;;  %v1091_v42 = vrot.slane %v3516_v52, 7  ;;  %v1093_v52 = vrot.slane %v996_v12, 7  ;;  %v2619_v12 = vld [vmem:[%s3784_s5 + $0x18] sm:$0xff] }
 0x183   : > { %v1567_v0 = vpop.f32.mrf.mxu2  ;;  %2643 = vmatpush.msra.mxu1 %v2619_v12 }
 0x184   : > { %1965 = vst.msk [vmem:[#allocation2 + $0xc8] sm:$0xff] %vm1939_vm4, %v1932_v60  ;;  %v1668_v48 = vrot.slane %v1567_v0, 1  ;;  %v1086_v3 = vsel %vm1031_vm1, %v1083_v45, %v1085_v17  ;;  %v1088_v58 = vsel %vm1031_vm1, %v1085_v17, %v1087_v39  ;;  %v1158_v0 = vadd.s32 4294967295, %v618_v53 }
 0x185   : > { %v1423_v62 = vpop.f32.mrf.mxu1  ;;  %v1462_v11 = vadd.f32 %v1420_v2, %v1086_v3  ;;  %v1284_v45 = vsel %vm1188_vm0, %v1088_v58, 0.0 }
 0x186   : > { %v1669_v9 = vsel %vm1614_vm3, %v1666_v51, %v1668_v48  ;;  %v1463_v47 = vadd.f32 %v1423_v62, %v1284_v45  ;;  %v1089_v51 = vrot.slane %v3501_v38, 7  ;;  %v3548_v31 = vpop.f32.mrf.mxu3  ;;  %vm1190_vm8 = vcmp.ge.s32.totalorder %v1158_v0, 0 }
 0x187   : > { %v1897_v10 = vadd.f32 %v1669_v9, %v1461_v8  ;;  %v625_v8 = vand.u32 15, %v403_v55 }
 0x188   : > { %v1090_v60 = vsel %vm1031_vm1, %v1087_v39, %v1089_v51 }
 0x189   : > { %v1933_v50 = vadd.f32 %v3523_v29, %v1897_v10  ;;  %v1092_v10 = vsel %vm1031_vm1, %v1089_v51, %v1091_v42  ;;  %v1742_v17 = vadd.s32 1, %v625_v8 }
 0x18a   : > { %v1286_v39 = vsel %vm1190_vm8, %v1092_v10, 0.0 }
 0x18b   : > { %1966 = vst.msk [vmem:[#allocation2 + $0xd0] sm:$0xff] %vm1939_vm4, %v1933_v50  ;;  %v1570_v20 = vpop.f32.mrf.mxu2  ;;  %v1996_v21 = vld [vmem:[#allocation2 + $0xc0] ss:$2 sm:$0xff]  ;;  %v2028_v22 = vld [vmem:[#allocation2 + $0xc1] ss:$2 sm:$0xff]  ;;  %vm1806_vm9 = vcmp.lt.s32.totalorder %v1742_v17, 16 }
 0x18c   : > { %v1670_v1 = vrot.slane %v1570_v20, 1  ;;  %v2047_v25 = vmax.f32 %v1996_v21, %v2028_v22  ;;  %v1094_v20 = vsel %vm1031_vm1, %v1091_v42, %v1093_v52  ;;  %v2657_v52 = vld [vmem:[%s3786_s7 + $0x8] sm:$0xff] }
 0x18d   : > { %v1426_v28 = vpop.f32.mrf.mxu1  ;;  %2682 = vmatpush.msra.mxu2 %v2657_v52 }
 0x18e   : > { %v1671_v26 = vsel %vm1614_vm3, %v1668_v48, %v1670_v1  ;;  %v3532_v24 = vmax.f32 %v2047_v25, 0.0  ;;  %v1464_v49 = vadd.f32 %v1426_v28, %v1090_v60  ;;  %v3560_v50 = vpop.f32.mrf.mxu3 }
 0x18f   : > { %v1866_v34 = vsel %vm1802_vm6, %v1671_v26, 0.0 }
 0x190   : > { %v1898_v33 = vadd.f32 %v1866_v34, %v1462_v11  ;;  %2871 = vmatmul.msk.f32.gmra.mxu3 %vm1939_vm4, %v3532_v24  ;;  %2905 = vmatmul.msk.f32.gmra.mxu0 %vm1939_vm4, %v3532_v24 }
 0x192   : > { %v1934_v30 = vadd.f32 %v3523_v29, %v1898_v33 }
 0x193   : > { %v1573_v56 = vpop.f32.mrf.mxu2 }
 0x194   : > { %1967 = vst.msk [vmem:[#allocation2 + $0xd8] sm:$0xff] %vm1939_vm4, %v1934_v30  ;;  %v1672_v27 = vrot.slane %v1573_v56, 1 }
 0x195   : > { %v1429_v5 = vpop.f32.mrf.mxu1 }
 0x196   : > { %v1673_v32 = vsel %vm1614_vm3, %v1670_v1, %v1672_v27  ;;  %v1465_v25 = vadd.f32 %v1429_v5, %v1286_v39  ;;  %v3572_v45 = vpop.f32.mrf.mxu3 }
 0x197   : > { %v1899_v2 = vadd.f32 %v1673_v32, %v1463_v47 }
 0x199   : > { %v1935_v57 = vadd.f32 %v3523_v29, %v1899_v2 }
 0x19b   : > { %1968 = vst.msk [vmem:[#allocation2 + $0xe0] sm:$0xff] %vm1939_vm4, %v1935_v57  ;;  %v1576_v41 = vpop.f32.mrf.mxu2  ;;  %v1998_v13 = vld [vmem:[#allocation2 + $0xd0] ss:$2 sm:$0xff]  ;;  %v2030_v38 = vld [vmem:[#allocation2 + $0xd1] ss:$2 sm:$0xff] }
 0x19c   : > { %v1674_v48 = vrot.slane %v1576_v41, 1  ;;  %v2048_v7 = vmax.f32 %v1998_v13, %v2030_v38 }
 0x19d   : > { %v1432_v21 = vpop.f32.mrf.mxu1 }
 0x19e   : > { %v1675_v62 = vsel %vm1614_vm3, %v1672_v27, %v1674_v48  ;;  %v3553_v9 = vmax.f32 %v2048_v7, 0.0  ;;  %v1466_v3 = vadd.f32 %v1432_v21, %v1094_v20  ;;  %v3578_v4 = vpop.f32.mrf.mxu3 }
 0x19f   : > { %v1868_v43 = vsel %vm1804_vm7, %v1675_v62, 0.0 }
 0x1a0   : > { %v1900_v14 = vadd.f32 %v1868_v43, %v1464_v49  ;;  %2872 = vmatmul.msk.f32.gmra.mxu3 %vm1939_vm4, %v3553_v9  ;;  %2906 = vmatmul.msk.f32.gmra.mxu0 %vm1939_vm4, %v3553_v9 }
 0x1a2   : > { %v1936_v19 = vadd.f32 %v3523_v29, %v1900_v14 }
 0x1a3   : > { %v1579_v22 = vpop.f32.mrf.mxu2 }
 0x1a4   : > { %1969 = vst.msk [vmem:[#allocation2 + $0xe8] sm:$0xff] %vm1939_vm4, %v1936_v19  ;;  %v1676_v1 = vrot.slane %v1579_v22, 1  ;;  %v2204_v22 = vrot.slane %v3572_v45, 1 }
 0x1a6   : > { %v1677_v11 = vsel %vm1614_vm3, %v1674_v48, %v1676_v1  ;;  %v1710_v26 = vsel %vm1614_vm3, %v1676_v1, 0.0  ;;  %v3582_v2 = vpop.f32.mrf.mxu3  ;;  %v2206_v1 = vrot.slane %v3578_v4, 1 }
 0x1a7   : > { %v1870_v58 = vsel %vm1806_vm9, %v1710_v26, 0.0  ;;  %v1901_v34 = vadd.f32 %v1677_v11, %v1465_v25  ;;  %v2202_v25 = vrot.slane %v3560_v50, 1  ;;  %v2201_v26 = vrot.slane %v3548_v31, 1 }
 0x1a8   : > { %v1902_v28 = vadd.f32 %v1870_v58, %v1466_v3  ;;  %v2208_v3 = vrot.slane %v3582_v2, 1 }
 0x1a9   : > { %v1937_v33 = vadd.f32 %v3523_v29, %v1901_v34  ;;  %v2205_v34 = vsel %vm1614_vm3, %v2202_v25, %v2204_v22 }
 0x1aa   : > { %v1938_v44 = vadd.f32 %v3523_v29, %v1902_v28  ;;  %v2209_v50 = vsel %vm1614_vm3, %v2206_v1, %v2208_v3 }
 0x1ab   : > { %1970 = vst.msk [vmem:[#allocation2 + $0xf0] sm:$0xff] %vm1939_vm4, %v1937_v33  ;;  %v2000_v30 = vld [vmem:[#allocation2 + $0xe0] ss:$2 sm:$0xff]  ;;  %v2032_v56 = vld [vmem:[#allocation2 + $0xe1] ss:$2 sm:$0xff] }
 0x1ac   : > { %1971 = vst.msk [vmem:[#allocation2 + $0xf8] sm:$0xff] %vm1939_vm4, %v1938_v44  ;;  %v2049_v36 = vmax.f32 %v2000_v30, %v2032_v56  ;;  %v2207_v44 = vsel %vm1614_vm3, %v2204_v22, %v2206_v1  ;;  %v2203_v30 = vsel %vm1614_vm3, %v2201_v26, %v2202_v25  ;;  %v2616_v26 = vld [vmem:[%s3784_s5] sm:$0xff] }
 0x1ae   : > { %v2065_v27 = vmax.f32 %v2049_v36, 0.0  ;;  %v3586_v53 = vpop.f32.mrf.mxu3 }
 0x1af   : > { %v2210_v11 = vrot.slane %v3586_v53, 1 }
 0x1b0   : > { %2873 = vmatmul.msk.f32.gmra.mxu3 %vm1939_vm4, %v2065_v27  ;;  %2907 = vmatmul.msk.f32.gmra.mxu0 %vm1939_vm4, %v2065_v27 }
 0x1b3   : > { %v2002_v47 = vld [vmem:[#allocation2 + $0xf0] ss:$2 sm:$0xff]  ;;  %v2034_v32 = vld [vmem:[#allocation2 + $0xf1] ss:$2 sm:$0xff] }
 0x1b4   : > { %v2050_v51 = vmax.f32 %v2002_v47, %v2034_v32  ;;  %v2211_v32 = vsel %vm1614_vm3, %v2208_v3, %v2210_v11 }
 0x1b6   : > { %v2066_v29 = vmax.f32 %v2050_v51, 0.0  ;;  %v3590_v54 = vpop.f32.mrf.mxu3 }
 0x1b8   : > { %2874 = vmatmul.msk.f32.gmra.mxu3 %vm1939_vm4, %v2066_v29  ;;  %2908 = vmatmul.msk.f32.gmra.mxu0 %vm1939_vm4, %v2066_v29 }
 0x1c0   : > { %2875 = vmatmul.msk.f32.vlgmr.msra.gmra.mxu3 %vm1939_vm4, %v3244_v23 }
 0x1c3   : > { %v3594_v55 = vpop.f32.mrf.mxu3 }
 0x1c8   : > { %2876 = vmatmul.msk.f32.gmra.mxu3 %vm1939_vm4, %v3274_v15 }
 0x1d0   : > { %2877 = vmatmul.msk.f32.gmra.mxu3 %vm1939_vm4, %v3302_v59  ;;  %v2618_v59 = vld [vmem:[%s3784_s5 + $0x10] sm:$0xff] }
 0x1d1   : > { %2644 = vmatpush.msra.mxu1 %v2618_v59 }
 0x1d3   : > { %v3598_v57 = vpop.f32.mrf.mxu3 }
 0x1d4   : > { %v2216_v5 = vrot.slane %v3598_v57, 1 }
 0x1d8   : > { %2878 = vmatmul.msk.f32.gmra.mxu3 %vm1939_vm4, %v3332_v35 }
 0x1e0   : > { %2879 = vmatmul.msk.f32.gmra.mxu3 %vm1939_vm4, %v3362_v16 }
 0x1e3   : > { %v2164_v23 = vpop.f32.mrf.mxu3 }
 0x1e4   : > { %v2218_v42 = vrot.slane %v2164_v23, 1 }
 0x1e6   : > { %v3606_v15 = vsel %vm1614_vm3, %v2216_v5, %v2218_v42 }
 0x1e8   : > { %2880 = vmatmul.msk.f32.gmra.mxu3 %vm1939_vm4, %v3388_v61 }
 0x1f0   : > { %2881 = vmatmul.msk.f32.gmra.mxu3 %vm1939_vm4, %v3411_v37 }
 0x1f3   : > { %v2167_v35 = vpop.f32.mrf.mxu3 }
 0x1f4   : > { %v2220_v16 = vrot.slane %v2167_v35, 1 }
 0x1f6   : > { %v3616_v60 = vsel %vm1614_vm3, %v2218_v42, %v2220_v16  ;;  %v2212_v42 = vrot.slane %v3590_v54, 1 }
 0x1f8   : > { %2882 = vmatmul.msk.f32.gmra.mxu3 %vm1939_vm4, %v3427_v46 }
 0x200   : > { %2883 = vmatmul.msk.f32.gmra.mxu3 %vm1939_vm4, %v3443_v63 }
 0x203   : > { %v2170_v61 = vpop.f32.mrf.mxu3 }
 0x204   : > { %v2222_v0 = vrot.slane %v2170_v61, 1 }
 0x206   : > { %v3623_v41 = vsel %vm1614_vm3, %v2220_v16, %v2222_v0 }
 0x208   : > { %2884 = vmatmul.msk.f32.gmra.mxu3 %vm1939_vm4, %v3461_v40 }
 0x210   : > { %2885 = vmatmul.msk.f32.gmra.mxu3 %vm1939_vm4, %v3483_v18  ;;  %v2334_v18 = vpop.f32.mrf.mxu0 }
 0x211   : > { %v2399_v51 = vrot.slane %v2334_v18, 2  ;;  %v2213_v18 = vsel %vm1614_vm3, %v2210_v11, %v2212_v42 }
 0x213   : > { %v2173_v37 = vpop.f32.mrf.mxu3 }
 0x214   : > { %v2224_v13 = vrot.slane %v2173_v37, 1 }
 0x216   : > { %v3630_v38 = vsel %vm1614_vm3, %v2222_v0, %v2224_v13  ;;  %v3679_v0 = vld [vmem:[%s3783_s4] ss:$0 sm:$0xff] }
 0x218   : > { %2886 = vmatmul.msk.f32.gmra.mxu3 %vm1939_vm4, %v3505_v6  ;;  %v2617_v6 = vld [vmem:[%s3784_s5 + $0x8] sm:$0xff]  ;;  %v2337_v49 = vpop.f32.mrf.mxu0 }
 0x219   : > { %2645 = vmatpush.msra.mxu1 %v2617_v6  ;;  %v2400_v28 = vrot.slane %v2337_v49, 2 }
 0x21b   : > { %v2401_v59 = vsel %vm2398_vm10, %v2399_v51, %v2400_v28  ;;  %2646 = vmatpush.msra.mxu1 %v2616_v26 }
 0x220   : > { %2887 = vmatmul.msk.f32.gmra.mxu3 %vm1939_vm4, %v3532_v24  ;;  %v2340_v43 = vpop.f32.mrf.mxu0 }
 0x221   : > { %v2402_v58 = vrot.slane %v2340_v43, 2 }
 0x223   : > { %v2176_v46 = vpop.f32.mrf.mxu3 }
 0x224   : > { %v2226_v63 = vrot.slane %v2176_v46, 1 }
 0x226   : > { %v3637_v48 = vsel %vm1614_vm3, %v2224_v13, %v2226_v63 }
 0x228   : > { %2888 = vmatmul.msk.f32.gmra.mxu3 %vm1939_vm4, %v3553_v9  ;;  %v2343_v17 = vpop.f32.mrf.mxu0 }
 0x229   : > { %v2404_v12 = vrot.slane %v2343_v17, 2 }
 0x22b   : > { %v2405_v23 = vsel %vm2398_vm10, %v2402_v58, %v2404_v12 }
 0x230   : > { %2889 = vmatmul.msk.f32.gmra.mxu3 %vm1939_vm4, %v2065_v27  ;;  %v2346_v19 = vpop.f32.mrf.mxu0 }
 0x231   : > { %v2406_v45 = vrot.slane %v2346_v19, 2  ;;  %v2214_v19 = vrot.slane %v3594_v55, 1 }
 0x233   : > { %v2179_v40 = vpop.f32.mrf.mxu3  ;;  %v2407_v16 = vsel %vm2398_vm10, %v2404_v12, %v2406_v45  ;;  %v2215_v12 = vsel %vm1614_vm3, %v2212_v42, %v2214_v19 }
 0x234   : > { %v2228_v7 = vrot.slane %v2179_v40, 1 }
 0x236   : > { %v3646_v24 = vsel %vm1614_vm3, %v2226_v63, %v2228_v7 }
 0x238   : > { %2890 = vmatmul.msk.f32.gmra.mxu3 %vm1939_vm4, %v2066_v29  ;;  %v2349_v21 = vpop.f32.mrf.mxu0  ;;  %v2403_v29 = vsel %vm2398_vm10, %v2400_v28, %v2402_v58 }
 0x239   : > { %v2408_v27 = vrot.slane %v2349_v21, 2 }
 0x23b   : > { %v3649_v8 = vpop.f32.mrf.mxu3  ;;  %v2409_v13 = vsel %vm2398_vm10, %v2406_v45, %v2408_v27 }
 0x23c   : > { %v2230_v62 = vrot.slane %v3649_v8, 1 }
 0x23e   : > { %v3655_v9 = vsel %vm1614_vm3, %v2228_v7, %v2230_v62 }
 0x240   : > { %v2352_v4 = vpop.f32.mrf.mxu0 }
 0x241   : > { %v2410_v46 = vrot.slane %v2352_v4, 2 }
 0x243   : > { %v2266_v10 = vpop.f32.mrf.mxu3 }
 0x244   : > { %v2267_v47 = vadd.f32 %v2266_v10, %v2203_v30 }
 0x246   : > { %v2447_v61 = vadd.f32 %v2401_v59, %v2267_v47 }
 0x248   : > { %v2355_v6 = vpop.f32.mrf.mxu0  ;;  %v2467_v49 = vadd.f32 %v3679_v0, %v2447_v61  ;;  %v2217_v61 = vsel %vm1614_vm3, %v2214_v19, %v2216_v5 }
 0x249   : > { %v2412_v25 = vrot.slane %v2355_v6, 2 }
 0x24a   : > { %v2484_v21 = vsel %vm2483_vm11, %v2467_v49, -inf }
 0x24b   : > { %v2269_v14 = vpop.f32.mrf.mxu3  ;;  %v2485_v55 = vrot.slane %v2484_v21, 4 }
 0x24c   : > { %v2270_v33 = vadd.f32 %v2269_v14, %v2205_v34  ;;  %v2411_v14 = vsel %vm2398_vm10, %v2408_v27, %v2410_v46 }
 0x24d   : > { %v2486_v47 = vmax.f32 %v2484_v21, %v2485_v55 }
 0x24e   : > { %v2448_v53 = vadd.f32 %v2403_v29, %v2270_v33 }
 0x24f   : > { %v2487_v59 = vrot.slane %v2486_v47, 2 }
 0x250   : > { %v2468_v40 = vadd.f32 %v3679_v0, %v2448_v53 }
 0x252   : > { %v2491_v17 = vsel %vm2483_vm11, %v2468_v40, -inf }
 0x253   : > { %v2272_v39 = vpop.f32.mrf.mxu3  ;;  %v2492_v3 = vrot.slane %v2491_v17, 4 }
 0x254   : > { %v2273_v56 = vadd.f32 %v2272_v39, %v2207_v44  ;;  %v2358_v44 = vpop.f32.mrf.mxu0 }
 0x255   : > { %v2414_v29 = vrot.slane %v2358_v44, 2 }
 0x256   : > { %v2449_v35 = vadd.f32 %v2405_v23, %v2273_v56  ;;  %v2493_v56 = vmax.f32 %v2491_v17, %v2492_v3 }
 0x258   : > { %v2469_v54 = vadd.f32 %v3679_v0, %v2449_v35 }
 0x25b   : > { %v2275_v20 = vpop.f32.mrf.mxu3 }
 0x25c   : > { %v2276_v31 = vadd.f32 %v2275_v20, %v2209_v50  ;;  %v2498_v20 = vsel %vm2483_vm11, %v2469_v54, -inf }
 0x25d   : > { %v2499_v58 = vrot.slane %v2498_v20, 4 }
 0x25e   : > { %v2450_v37 = vadd.f32 %v2407_v16, %v2276_v31 }
 0x25f   : > { %v2500_v27 = vmax.f32 %v2498_v20, %v2499_v58 }
 0x260   : > { %v2470_v52 = vadd.f32 %v3679_v0, %v2450_v37 }
 0x261   : > { %v2501_v23 = vrot.slane %v2500_v27, 2 }
 0x262   : > { %v2505_v22 = vsel %vm2483_vm11, %v2470_v52, -inf  ;;  %v2488_v52 = vmax.f32 %v2486_v47, %v2487_v59 }
 0x263   : > { %v2278_v36 = vpop.f32.mrf.mxu3  ;;  %v2506_v28 = vrot.slane %v2505_v22, 4  ;;  %v2502_v6 = vmax.f32 %v2500_v27, %v2501_v23 }
 0x264   : > { %v2279_v2 = vadd.f32 %v2278_v36, %v2211_v32  ;;  %v2413_v36 = vsel %vm2398_vm10, %v2410_v46, %v2412_v25 }
 0x265   : > { %v2507_v31 = vmax.f32 %v2505_v22, %v2506_v28  ;;  %v2503_v19 = vrot.slane %v2502_v6, 1  ;;  %v2489_v22 = vrot.slane %v2488_v52, 1 }
 0x266   : > { %v2451_v63 = vadd.f32 %v2409_v13, %v2279_v2  ;;  %v2494_v2 = vrot.slane %v2493_v56, 2  ;;  %v2361_v13 = vpop.f32.mrf.mxu0 }
 0x267   : > { %v2508_v35 = vrot.slane %v2507_v31, 2  ;;  %v2416_v57 = vrot.slane %v2361_v13, 2 }
 0x268   : > { %v2471_v43 = vadd.f32 %v3679_v0, %v2451_v63  ;;  %v2495_v40 = vmax.f32 %v2493_v56, %v2494_v2 }
 0x26a   : > { %v2512_v11 = vsel %vm2483_vm11, %v2471_v43, -inf }
 0x26b   : > { %v2281_v7 = vpop.f32.mrf.mxu3  ;;  %v2513_v45 = vrot.slane %v2512_v11, 4 }
 0x26c   : > { %v2282_v10 = vadd.f32 %v2281_v7, %v2213_v18  ;;  %v2415_v7 = vsel %vm2398_vm10, %v2412_v25, %v2414_v29 }
 0x26d   : > { %v2514_v32 = vmax.f32 %v2512_v11, %v2513_v45 }
 0x26e   : > { %v2452_v39 = vadd.f32 %v2411_v14, %v2282_v10  ;;  %v2509_v10 = vmax.f32 %v2507_v31, %v2508_v35  ;;  %v2364_v25 = vpop.f32.mrf.mxu0 }
 0x26f   : > { %v2515_v46 = vrot.slane %v2514_v32, 2 }
 0x270   : > { %v2472_v1 = vadd.f32 %v3679_v0, %v2452_v39  ;;  %v2496_v39 = vrot.slane %v2495_v40, 1 }
 0x271   : > { %v2516_v14 = vmax.f32 %v2514_v32, %v2515_v46 }
 0x272   : > { %v2519_v34 = vsel %vm2483_vm11, %v2472_v1, -inf  ;;  %v2510_v1 = vrot.slane %v2509_v10, 1 }
 0x273   : > { %v2284_v33 = vpop.f32.mrf.mxu3  ;;  %v2520_v50 = vrot.slane %v2519_v34, 4  ;;  %v2517_v26 = vrot.slane %v2516_v14, 1 }
 0x274   : > { %v2285_v30 = vadd.f32 %v2284_v33, %v2215_v12  ;;  %v2417_v12 = vsel %vm2398_vm10, %v2414_v29, %v2416_v57  ;;  %v2504_v33 = vmax.f32 %v2502_v6, %v2503_v19  ;;  %v2511_v56 = vmax.f32 %v2509_v10, %v2510_v1 }
 0x275   : > { %v2521_v53 = vmax.f32 %v2519_v34, %v2520_v50  ;;  %v2497_v34 = vmax.f32 %v2495_v40, %v2496_v39  ;;  %v2518_v27 = vmax.f32 %v2516_v14, %v2517_v26 }
 0x276   : > { %v2453_v4 = vadd.f32 %v2413_v36, %v2285_v30  ;;  %v2490_v30 = vmax.f32 %v2488_v52, %v2489_v22  ;;  %v2418_v36 = vrot.slane %v2364_v25, 2  ;;  %v2367_v59 = vpop.f32.mrf.mxu0 }
 0x277   : > { %v2522_v54 = vrot.slane %v2521_v53, 2  ;;  %v2420_v6 = vrot.slane %v2367_v59, 2 }
 0x278   : > { %v2473_v51 = vadd.f32 %v3679_v0, %v2453_v4  ;;  %v2596_v47 = vsel %vm1031_vm1, %v2490_v30, %v2497_v34  ;;  %v2419_v46 = vsel %vm2398_vm10, %v2416_v57, %v2418_v36 }
 0x279   : > { %v2523_v5 = vmax.f32 %v2521_v53, %v2522_v54  ;;  %v2598_v32 = vsel %vm2597_vm12, %v2596_v47, %v2504_v33  ;;  %v2421_v39 = vsel %vm2398_vm10, %v2418_v36, %v2420_v6 }
 0x27a   : > { %v2526_v42 = vsel %vm2483_vm11, %v2473_v51, -inf  ;;  %v2600_v2 = vsel %vm2599_vm13, %v2598_v32, %v2511_v56 }
 0x27b   : > { %v2527_v16 = vrot.slane %v2526_v42, 4  ;;  %v2287_v37 = vpop.f32.mrf.mxu3  ;;  %v2524_v55 = vrot.slane %v2523_v5, 1  ;;  %v2602_v35 = vsel %vm2601_vm14, %v2600_v2, %v2518_v27 }
 0x27c   : > { %v2288_v63 = vadd.f32 %v2287_v37, %v2217_v61 }
 0x27d   : > { %v2528_v18 = vmax.f32 %v2526_v42, %v2527_v16 }
 0x27e   : > { %v2454_v49 = vadd.f32 %v2415_v7, %v2288_v63 }
 0x27f   : > { %v2529_v43 = vrot.slane %v2528_v18, 2 }
 0x280   : > { %v2474_v17 = vadd.f32 %v3679_v0, %v2454_v49 }
 0x281   : > { %v2530_v20 = vmax.f32 %v2528_v18, %v2529_v43  ;;  %v2370_v43 = vpop.f32.mrf.mxu0 }
 0x282   : > { %v2533_v21 = vsel %vm2483_vm11, %v2474_v17, -inf }
 0x283   : > { %v2534_v3 = vrot.slane %v2533_v21, 4  ;;  %v2290_v11 = vpop.f32.mrf.mxu3  ;;  %v2531_v44 = vrot.slane %v2530_v20, 1 }
 0x284   : > { %v2291_v58 = vadd.f32 %v2290_v11, %v3606_v15  ;;  %v2525_v15 = vmax.f32 %v2523_v5, %v2524_v55 }
 0x285   : > { %v2535_v28 = vmax.f32 %v2533_v21, %v2534_v3  ;;  %v2532_v51 = vmax.f32 %v2530_v20, %v2531_v44  ;;  %v2422_v21 = vrot.slane %v2370_v43, 2 }
 0x286   : > { %v2455_v45 = vadd.f32 %v2417_v12, %v2291_v58  ;;  %v2604_v61 = vsel %vm2603_vm15, %v2602_v35, %v2525_v15 }
 0x287   : > { %v2536_v50 = vrot.slane %v2535_v28, 2  ;;  %v2605_v63 = vsel %vm2398_vm10, %v2604_v61, %v2532_v51  ;;  %v2423_v12 = vsel %vm2398_vm10, %v2420_v6, %v2422_v21 }
 0x288   : > { %v2475_v4 = vadd.f32 %v3679_v0, %v2455_v45 }
 0x289   : > { %v2537_v31 = vmax.f32 %v2535_v28, %v2536_v50  ;;  %v2373_v58 = vpop.f32.mrf.mxu0 }
 0x28a   : > { %v2540_v29 = vsel %vm2483_vm11, %v2475_v4, -inf  ;;  %v2424_v56 = vrot.slane %v2373_v58, 2 }
 0x28b   : > { %v2538_v53 = vrot.slane %v2537_v31, 1  ;;  %v2541_v23 = vrot.slane %v2540_v29, 4  ;;  %v2293_v42 = vpop.f32.mrf.mxu3 }
 0x28c   : > { %v2294_v16 = vadd.f32 %v2293_v42, %v3616_v60  ;;  %v2425_v51 = vsel %vm2398_vm10, %v2422_v21, %v2424_v56 }
 0x28d   : > { %v2539_v37 = vmax.f32 %v2537_v31, %v2538_v53  ;;  %v2542_v13 = vmax.f32 %v2540_v29, %v2541_v23 }
 0x28e   : > { %v2456_v40 = vadd.f32 %v2419_v46, %v2294_v16 }
 0x28f   : > { %v2606_v54 = vsel %vm1614_vm3, %v2605_v63, %v2539_v37  ;;  %v2543_v49 = vrot.slane %v2542_v13, 2 }
 0x290   : > { %v2614_v18 = vmax.f32 %v2606_v54, 0.0  ;;  %v2476_v7 = vadd.f32 %v3679_v0, %v2456_v40  ;;  %v2656_v40 = vld [vmem:[%s3786_s7] sm:$0xff] }
 0x291   : > { %v2544_v17 = vmax.f32 %v2542_v13, %v2543_v49  ;;  %v2376_v15 = vpop.f32.mrf.mxu0  ;;  %2683 = vmatpush.msra.mxu2 %v2656_v40 }
 0x292   : > { %v2547_v52 = vsel %vm2483_vm11, %v2476_v7, -inf  ;;  %2909 = vmatmul.msk.f32.vlgmr.msra.gmra.mxu1 %vm2624_vm2, %v2614_v18  ;;  %v2426_v42 = vrot.slane %v2376_v15, 2 }
 0x293   : > { %v2548_v60 = vrot.slane %v2547_v52, 4  ;;  %v2296_v10 = vpop.f32.mrf.mxu3  ;;  %v2545_v22 = vrot.slane %v2544_v17, 1 }
 0x294   : > { %v2297_v14 = vadd.f32 %v2296_v10, %v3623_v41  ;;  %v2427_v63 = vsel %vm2398_vm10, %v2424_v56, %v2426_v42 }
 0x295   : > { %v2549_v57 = vmax.f32 %v2547_v52, %v2548_v60  ;;  %v2546_v41 = vmax.f32 %v2544_v17, %v2545_v22 }
 0x296   : > { %v2457_v5 = vadd.f32 %v2421_v39, %v2297_v14 }
 0x297   : > { %v2550_v19 = vrot.slane %v2549_v57, 2 }
 0x298   : > { %v2477_v20 = vadd.f32 %v3679_v0, %v2457_v5 }
 0x299   : > { %v2551_v1 = vmax.f32 %v2549_v57, %v2550_v19  ;;  %v2379_v54 = vpop.f32.mrf.mxu0 }
 0x29a   : > { %v2554_v3 = vsel %vm2483_vm11, %v2477_v20, -inf  ;;  %v2428_v52 = vrot.slane %v2379_v54, 2 }
 0x29b   : > { %v2552_v11 = vrot.slane %v2551_v1, 1  ;;  %v2555_v25 = vrot.slane %v2554_v3, 4  ;;  %v2299_v26 = vpop.f32.mrf.mxu3 }
 0x29c   : > { %v2300_v34 = vadd.f32 %v2299_v26, %v3630_v38  ;;  %v2429_v5 = vsel %vm2398_vm10, %v2426_v42, %v2428_v52  ;;  %v2248_v26 = vsel %vm1614_vm3, %v2230_v62, 0.0  ;;  %v2930_v42 = vld [vmem:[%s3787_s8] ss:$0 sm:$0xff] }
 0x29d   : > { %v2553_v55 = vmax.f32 %v2551_v1, %v2552_v11  ;;  %v2556_v28 = vmax.f32 %v2554_v3, %v2555_v25 }
 0x29e   : > { %v2458_v33 = vadd.f32 %v2423_v12, %v2300_v34  ;;  %v2446_v34 = vsel %vm2398_vm10, %v2428_v52, 0.0 }
 0x29f   : > { %v2607_v44 = vsel %vm1031_vm1, %v2546_v41, %v2553_v55  ;;  %v2557_v45 = vrot.slane %v2556_v28, 2 }
 0x2a0   : > { %v2478_v30 = vadd.f32 %v3679_v0, %v2458_v33 }
 0x2a1   : > { %v2558_v50 = vmax.f32 %v2556_v28, %v2557_v45 }
 0x2a2   : > { %v2561_v36 = vsel %vm2483_vm11, %v2478_v30, -inf }
 0x2a3   : > { %v2559_v27 = vrot.slane %v2558_v50, 1  ;;  %v2562_v4 = vrot.slane %v2561_v36, 4  ;;  %v2302_v47 = vpop.f32.mrf.mxu3 }
 0x2a4   : > { %v2303_v38 = vadd.f32 %v2302_v47, %v3637_v48 }
 0x2a5   : > { %v2560_v31 = vmax.f32 %v2558_v50, %v2559_v27  ;;  %v2563_v32 = vmax.f32 %v2561_v36, %v2562_v4 }
 0x2a6   : > { %v2459_v29 = vadd.f32 %v2425_v51, %v2303_v38 }
 0x2a7   : > { %v2608_v2 = vsel %vm2597_vm12, %v2607_v44, %v2560_v31  ;;  %v2564_v53 = vrot.slane %v2563_v32, 2 }
 0x2a8   : > { %v2479_v23 = vadd.f32 %v3679_v0, %v2459_v29 }
 0x2a9   : > { %v2565_v59 = vmax.f32 %v2563_v32, %v2564_v53 }
 0x2aa   : > { %v2568_v35 = vsel %vm2483_vm11, %v2479_v23, -inf }
 0x2ab   : > { %v2566_v16 = vrot.slane %v2565_v59, 1  ;;  %v2569_v61 = vrot.slane %v2568_v35, 4  ;;  %v2305_v37 = vpop.f32.mrf.mxu3 }
 0x2ac   : > { %v2306_v13 = vadd.f32 %v2305_v37, %v3646_v24 }
 0x2ad   : > { %v2567_v48 = vmax.f32 %v2565_v59, %v2566_v16  ;;  %v2570_v46 = vmax.f32 %v2568_v35, %v2569_v61 }
 0x2ae   : > { %v2460_v18 = vadd.f32 %v2427_v63, %v2306_v13 }
 0x2af   : > { %v2609_v7 = vsel %vm2599_vm13, %v2608_v2, %v2567_v48  ;;  %v2571_v6 = vrot.slane %v2570_v46, 2 }
 0x2b0   : > { %v2480_v49 = vadd.f32 %v3679_v0, %v2460_v18 }
 0x2b1   : > { %v2572_v60 = vmax.f32 %v2570_v46, %v2571_v6 }
 0x2b2   : > { %v2575_v24 = vsel %vm2483_vm11, %v2480_v49, -inf }
 0x2b3   : > { %v2573_v10 = vrot.slane %v2572_v60, 1  ;;  %v2576_v43 = vrot.slane %v2575_v24, 4  ;;  %v2308_v14 = vpop.f32.mrf.mxu3 }
 0x2b4   : > { %v2309_v17 = vadd.f32 %v2308_v14, %v3655_v9 }
 0x2b5   : > { %v2574_v57 = vmax.f32 %v2572_v60, %v2573_v10  ;;  %v2577_v39 = vmax.f32 %v2575_v24, %v2576_v43 }
 0x2b6   : > { %v2461_v19 = vadd.f32 %v2429_v5, %v2309_v17 }
 0x2b7   : > { %v2578_v20 = vrot.slane %v2577_v39, 2  ;;  %v2610_v21 = vsel %vm2601_vm14, %v2609_v7, %v2574_v57 }
 0x2b8   : > { %v2481_v22 = vadd.f32 %v3679_v0, %v2461_v19 }
 0x2b9   : > { %v2579_v1 = vmax.f32 %v2577_v39, %v2578_v20 }
 0x2ba   : > { %v2582_v3 = vsel %vm2483_vm11, %v2481_v22, -inf }
 0x2bb   : > { %v2580_v11 = vrot.slane %v2579_v1, 1  ;;  %v2583_v25 = vrot.slane %v2582_v3, 4  ;;  %v2311_v9 = vpop.f32.mrf.mxu3 }
 0x2bc   : > { %v2312_v58 = vadd.f32 %v2311_v9, %v2248_v26 }
 0x2bd   : > { %v2581_v41 = vmax.f32 %v2579_v1, %v2580_v11  ;;  %v2584_v55 = vmax.f32 %v2582_v3, %v2583_v25 }
 0x2be   : > { %v2462_v28 = vadd.f32 %v2446_v34, %v2312_v58 }
 0x2bf   : > { %v2585_v12 = vrot.slane %v2584_v55, 2  ;;  %v2611_v33 = vsel %vm2603_vm15, %v2610_v21, %v2581_v41 }
 0x2c0   : > { %v2482_v44 = vadd.f32 %v3679_v0, %v2462_v28  ;;  %v2929_v0 = vld [vmem:[%s3785_s6] ss:$0 sm:$0xff] }
 0x2c1   : > { %v2586_v45 = vmax.f32 %v2584_v55, %v2585_v12 }
 0x2c2   : > { %v2589_v30 = vsel %vm2483_vm11, %v2482_v44, -inf }
 0x2c3   : > { %v2587_v56 = vrot.slane %v2586_v45, 1  ;;  %v2590_v50 = vrot.slane %v2589_v30, 4 }
 0x2c5   : > { %v2588_v8 = vmax.f32 %v2586_v45, %v2587_v56  ;;  %v2591_v36 = vmax.f32 %v2589_v30, %v2590_v50 }
 0x2c7   : > { %v2592_v62 = vrot.slane %v2591_v36, 2  ;;  %v2612_v27 = vsel %vm2398_vm10, %v2611_v33, %v2588_v8 }
 0x2c9   : > { %v2593_v4 = vmax.f32 %v2591_v36, %v2592_v62 }
 0x2cb   : > { %v2594_v47 = vrot.slane %v2593_v4, 1 }
 0x2cd   : > { %v2595_v15 = vmax.f32 %v2593_v4, %v2594_v47 }
 0x2cf   : > { %v2613_v38 = vsel %vm1614_vm3, %v2612_v27, %v2595_v15 }
 0x2d0   : > { %v2615_v31 = vmax.f32 %v2613_v38, 0.0 }
 0x2d2   : > { %2910 = vmatmul.msk.f32.gmra.mxu1 %vm2624_vm2, %v2615_v31 }
 0x30f   : > { %v2648_v32 = vpop.f32.mrf.mxu1 }
 0x310   : > { %v2649_v51 = vadd.f32 %v2929_v0, %v2648_v32 }
 0x312   : > { %v2654_v29 = vmax.f32 %v2649_v51, 0.0 }
 0x314   : > { %2911 = vmatmul.msk.f32.vlgmr.msra.gmra.mxu2 %vm1939_vm4, %v2654_v29 }
 0x34f   : > { %v2651_v2 = vpop.f32.mrf.mxu1 }
 0x350   : > { %v2652_v53 = vadd.f32 %v2929_v0, %v2651_v2 }
 0x352   : > { %v2655_v23 = vmax.f32 %v2652_v53, 0.0 }
 0x354   : > { %2912 = vmatmul.msk.f32.gmra.mxu2 %vm1939_vm4, %v2655_v23 }
 0x397   : > { %v2685_v59 = vpop.f32.mrf.mxu2 }
 0x398   : > { %v2686_v35 = vadd.f32 %v2930_v42, %v2685_v59 }
 0x39a   : > { %2691 = vst [vmem:[%s337_s22] sm:$0xff] %v2686_v35 }
 0x3d7   : > { %v2688_v16 = vpop.f32.mrf.mxu2 }
 0x3d8   : > { %v2689_v61 = vadd.f32 %v2930_v42, %v2688_v16 }
 0x3da   : > { %2692 = vst [vmem:[%s337_s22 + $0x8] sm:$0xff] %v2689_v61 }
 0x3db PF: > { %s19_s30 = sadd.s32 1, %s2938_s30  }
 0x3dc   : > { %p16_p5 = scmp.ge.s32.totalorder %s19_s30, 4  }
 0x3de   :  { %18 = sbr.rel (!%p16_p5) target bundleno = 1 (0x1), region = 121 }

</bundles_post_ra>
